<compile_context>
chip_gen: v7x
topology: tpu7x:2x2x1
jax: 0.10.0
libtpu: 0.0.40
codegen_flags: <defaults>
</compile_context>

<pallas_src>
import functools

import jax
import jax.numpy as jnp
from jax import lax
from jax.experimental import pallas as pl
from jax.experimental.pallas import tpu as pltpu


LANE = 128                     # pad class/feature dims to full 128-lane tiles
SUBLANE = 8                    # batch tile must be a multiple of 8 sublanes
DEFAULT_TB = 2048              # requested batch tile; shrunk to fit the VMEM cap
NEG_BIG = -1e30                # bias of padded classes -> exp() underflows to 0
VMEM_SLACK_BYTES = 6 * 1024 * 1024   # headroom for compiler scratch / semaphores


def _round_up(n, m):
    return (n + m - 1) // m * m


def _vmem_cap_bytes():
    """Per-generation scoped-VMEM cap for the kernel working set."""
    kind = ""
    try:
        kind = jax.devices()[0].device_kind.lower()
    except Exception:
        pass
    if ("v5e" in kind) or ("v5 lite" in kind) or ("v6" in kind):
        return 96 * 1024 * 1024        # v5e / v6e: 128 MiB physical VMEM
    return 48 * 1024 * 1024            # v7x: 64 MiB per TensorCore; safe default


def _folded_mlp_softmax_kernel(x_ref, w_ref, b_ref, out_ref):
    # Single MXU pass over the folded affine map; accumulate in f32 even when
    # x / w are streamed as bf16.
    logits = jnp.dot(x_ref[...], w_ref[...], preferred_element_type=jnp.float32)
    logits = logits + b_ref[...]                       # bias add in f32
    # Numerically-stable softmax over the (padded, lane-dense) class dim.
    # Padded classes carry bias -1e30, so their exp() is exactly 0 and the
    # denominator equals the real-class denominator.
    m = jnp.max(logits, axis=-1, keepdims=True)
    e = jnp.exp(logits - m)
    s = jnp.sum(e, axis=-1, keepdims=True)
    out_ref[...] = e * pl.reciprocal(s, approx=False)  # divide on the EUP slot


def _mm_hi(a, b):
    # Exact-as-possible f32 matmul for the host-side weight fold.
    return jnp.matmul(a, b, precision=lax.Precision.HIGHEST)


def _fold_affine_chain(params):
    """Fold the activation-free Linear chain into one (in, out) weight + bias."""
    w = params["w_in"].astype(jnp.float32)
    b = params["b_in"].astype(jnp.float32)
    for tag in ("h0", "h1", "h2", "cls"):
        wi = params[f"w_{tag}"].astype(jnp.float32)
        bi = params[f"b_{tag}"].astype(jnp.float32)
        w = _mm_hi(w, wi)
        b = _mm_hi(b, wi) + bi
    return w, b          # (in_feat, cls_num), (1, cls_num)


def _choose_tb(batch, tb_request, per_row_bytes, fixed_bytes, vmem_cap):
    """Pick a batch tile: multiple of 8, >=2 tiles for megacore, fits the cap."""
    tb = max(SUBLANE, _round_up(min(tb_request, _round_up(batch, SUBLANE)), SUBLANE))
    # At least two tiles when the batch is big enough, so v7x's two
    # TensorCores both get work under dimension_semantics=("parallel",).
    if batch > 2 * SUBLANE:
        tb = min(tb, _round_up(-(-batch // 2), SUBLANE))
    # Shrink until the double-buffered working set fits the per-gen VMEM cap
    # (this also guards any caller-supplied tb).
    while tb > SUBLANE and tb * per_row_bytes + fixed_bytes + VMEM_SLACK_BYTES > vmem_cap:
        tb = max(SUBLANE, _round_up(tb // 2, SUBLANE))
    return tb


@functools.partial(jax.jit, static_argnames=("tb", "compute_dtype"))
def deep_logistic_regression(x, params, tb=DEFAULT_TB, compute_dtype=jnp.float32):
    """x: (B, C, H, W) float32.  params: dict of (in,out) weights + (1,out) biases."""
    B = x.shape[0]
    x2d = x.reshape(B, -1).astype(jnp.float32)        # == torch x.reshape(B, -1)
    in_feat = x2d.shape[1]
    cls_num = params["w_cls"].shape[1]

    in_pad = _round_up(in_feat, LANE)
    c_pad = _round_up(cls_num, LANE)

    # Fold the 5 Linear layers (no activations) into one affine map (f32).
    w_fold, b_fold = _fold_affine_chain(params)

    # Pad the feature (K) dim only if needed (3072 already % 128 == 0).
    if in_pad != in_feat:
        x2d = jnp.pad(x2d, ((0, 0), (0, in_pad - in_feat)))
        w_fold = jnp.pad(w_fold, ((0, in_pad - in_feat), (0, 0)))
    # Pad the class dim to a full 128-lane (lane-dense) store; padded classes
    # get bias -1e30 so softmax assigns them exactly 0.
    w_fold = jnp.pad(w_fold, ((0, 0), (0, c_pad - cls_num)))
    b_fold = jnp.pad(b_fold, ((0, 0), (0, c_pad - cls_num)), constant_values=NEG_BIG)

    # Optional reduced-precision streaming (accumulation stays f32 in-kernel).
    # TODO(synk): flip the default to bf16 for ~2x on the HBM-bound x stream
    # once the 1e-5 parity requirement vs. the f32 reference can be relaxed.
    x2d = x2d.astype(compute_dtype)
    w_fold = w_fold.astype(compute_dtype)
    x_item = jnp.dtype(compute_dtype).itemsize

    # Tile sizing + VMEM budget (tied together so any tb is compile-safe).
    per_row_bytes = 2 * in_pad * x_item + 2 * c_pad * 4       # dbl-buffered x + out
    fixed_bytes = 2 * (in_pad * c_pad * x_item + c_pad * 4)   # resident w/b (x2 margin)
    vmem_cap = _vmem_cap_bytes()
    tb = _choose_tb(B, tb, per_row_bytes, fixed_bytes, vmem_cap)
    vmem_limit = min(vmem_cap, tb * per_row_bytes + fixed_bytes + VMEM_SLACK_BYTES)

    grid = (pl.cdiv(B, tb),)

    def resident_spec(arr):
        # Whole array, constant block index, single-buffered: DMA'd once and
        # kept VMEM-resident across all batch tiles (no wasted second buffer).
        return pl.BlockSpec(arr.shape, lambda i: (0,) * arr.ndim,
                            pipeline_mode=pl.Buffered(1))

    cost = pl.CostEstimate(
        flops=2 * B * in_pad * c_pad,
        transcendentals=B * (c_pad + 1),                       # exp + reciprocal
        bytes_accessed=(B * in_pad * x_item                    # x stream
                        + in_pad * c_pad * x_item + c_pad * 4  # folded weight/bias
                        + B * c_pad * 4),                      # output
    )

    out = pl.pallas_call(
        _folded_mlp_softmax_kernel,
        out_shape=jax.ShapeDtypeStruct((B, c_pad), jnp.float32),
        grid=grid,
        in_specs=[pl.BlockSpec((tb, in_pad), lambda i: (i, 0)),
                  resident_spec(w_fold),
                  resident_spec(b_fold)],
        out_specs=pl.BlockSpec((tb, c_pad), lambda i: (i, 0)),
        compiler_params=pltpu.CompilerParams(
            dimension_semantics=("parallel",),   # shard batch tiles across v7x's 2 TCs
            vmem_limit_bytes=int(vmem_limit),
        ),
        cost_estimate=cost,
    )(x2d, w_fold, b_fold)

    # Drop the lane padding of the class dim (the batch was never padded).
    return out[:, :cls_num]


def init_params(key, in_feat, hidden, cls_num):
    """Deterministic synthetic init (PyTorch Linear-like uniform ranges)."""
    def linear(key, fan_in, fan_out):
        kw, kb = jax.random.split(key)
        bound = 1.0 / jnp.sqrt(fan_in)
        # stored as (in, out) so the math is x @ W + b
        w = jax.random.uniform(kw, (fan_in, fan_out), jnp.float32, -bound, bound)
        b = jax.random.uniform(kb, (1, fan_out), jnp.float32, -bound, bound)
        return w, b

    keys = jax.random.split(key, 5)
    w_in, b_in = linear(keys[0], in_feat, hidden)
    w_h0, b_h0 = linear(keys[1], hidden, hidden)
    w_h1, b_h1 = linear(keys[2], hidden, hidden)
    w_h2, b_h2 = linear(keys[3], hidden, hidden)
    w_cls, b_cls = linear(keys[4], hidden, cls_num)
    return dict(w_in=w_in, b_in=b_in, w_h0=w_h0, b_h0=b_h0,
                w_h1=w_h1, b_h1=b_h1, w_h2=w_h2, b_h2=b_h2,
                w_cls=w_cls, b_cls=b_cls)


def _reference(x, p):
    # Pure-JAX reference matching the PyTorch forward (no activations, unfolded).
    h = x.reshape(x.shape[0], -1) @ p["w_in"] + p["b_in"]
    h = h @ p["w_h0"] + p["b_h0"]
    h = h @ p["w_h1"] + p["b_h1"]
    h = h @ p["w_h2"] + p["b_h2"]
    logits = h @ p["w_cls"] + p["b_cls"]
    return jax.nn.softmax(logits, axis=-1)


if __name__ == "__main__":
    cls_num, hidden = 10, 32
    B, C, H, W = 2, 3, 32, 32              # module default in_feat = 3*32*32 = 3072
    in_feat = C * H * W

    key = jax.random.PRNGKey(0)
    kx, kp = jax.random.split(key)
    x = jax.random.normal(kx, (B, C, H, W), jnp.float32)
    params = init_params(kp, in_feat, hidden, cls_num)

    ref = _reference(x, params)

    # Default f32 path: folded chain must stay within 1e-5 of the unfolded ref.
    out = jax.block_until_ready(deep_logistic_regression(x, params))
    assert out.shape == (B, cls_num)
    assert bool(jnp.allclose(out, ref, atol=1e-5, rtol=1e-5)), "f32 mismatch vs reference"
    assert bool(jnp.allclose(jnp.sum(out, axis=-1), 1.0, atol=1e-5)), "softmax rows must sum to 1"

    # bf16-streamed path (f32 accumulation): exercises the reduced-HBM option.
    out_bf16 = jax.block_until_ready(
        deep_logistic_regression(x, params, compute_dtype=jnp.bfloat16))
    assert out_bf16.shape == (B, cls_num)
    assert bool(jnp.allclose(out_bf16, ref, atol=3e-2)), "bf16 path diverged from reference"

    print("KERNEL_OK")
</pallas_src>

<mosaic_0001>
module attributes {stable_mosaic.version = 11 : i64} {
  func.func @_folded_mlp_softmax_kernel(%arg0: i32, %arg1: memref<8x3072xf32, #tpu.memory_space<vmem>>, %arg2: memref<3072x128xf32, #tpu.memory_space<vmem>>, %arg3: memref<1x128xf32, #tpu.memory_space<vmem>>, %arg4: memref<8x128xf32, #tpu.memory_space<vmem>>) attributes {dimension_semantics = [#tpu.dimension_semantics<parallel>], iteration_bounds = array<i64: 1>, scalar_prefetch = 0 : i64, scratch_operands = 0 : i64, tpu.core_type = #tpu.core_type<tc>, window_params = [{transform_indices = @transform_0, window_bounds = array<i64: 8, 3072>}, {pipeline_mode = #tpu.pipeline_mode<synchronous>, transform_indices = @transform_1, window_bounds = array<i64: 3072, 128>}, {pipeline_mode = #tpu.pipeline_mode<synchronous>, transform_indices = @transform_2, window_bounds = array<i64: 1, 128>}, {transform_indices = @transform_3, window_bounds = array<i64: 8, 128>}]} {
    %c0 = arith.constant 0 : index
    %c0_0 = arith.constant 0 : index
    %0 = vector.load %arg1[%c0, %c0_0] : memref<8x3072xf32, #tpu.memory_space<vmem>>, vector<8x3072xf32>
    %c0_1 = arith.constant 0 : index
    %c0_2 = arith.constant 0 : index
    %1 = vector.load %arg2[%c0_1, %c0_2] : memref<3072x128xf32, #tpu.memory_space<vmem>>, vector<3072x128xf32>
    %cst = arith.constant dense<0.000000e+00> : vector<8x128xf32>
    %2 = tpu.matmul %0, %1, %cst {dimension_numbers = #tpu.dot_dimension_numbers<[1], [0], [0], [1], [0, 0, 1, 1], [], []>} : vector<8x3072xf32>, vector<3072x128xf32>, vector<8x128xf32> -> vector<8x128xf32>
    %c0_3 = arith.constant 0 : index
    %c0_4 = arith.constant 0 : index
    %3 = vector.load %arg3[%c0_3, %c0_4] : memref<1x128xf32, #tpu.memory_space<vmem>>, vector<1x128xf32>
    %4 = vector.broadcast %3 : vector<1x128xf32> to vector<8x128xf32>
    %5 = arith.addf %2, %4 : vector<8x128xf32>
    %cst_5 = arith.constant dense<0xFF800000> : vector<8xf32>
    %6 = vector.multi_reduction <maximumf>, %5, %cst_5 [1] : vector<8x128xf32> to vector<8xf32>
    %7 = vector.shape_cast %6 : vector<8xf32> to vector<8x1xf32>
    %8 = vector.broadcast %7 : vector<8x1xf32> to vector<8x128xf32>
    %9 = arith.subf %5, %8 : vector<8x128xf32>
    %10 = math.exp %9 : vector<8x128xf32>
    %cst_6 = arith.constant dense<0.000000e+00> : vector<8xf32>
    %11 = vector.multi_reduction <add>, %10, %cst_6 [1] : vector<8x128xf32> to vector<8xf32>
    %12 = vector.shape_cast %11 : vector<8xf32> to vector<8x1xf32>
    %13 = tpu.reciprocal %12 : vector<8x1xf32> -> vector<8x1xf32>
    %14 = vector.broadcast %13 : vector<8x1xf32> to vector<8x128xf32>
    %15 = arith.mulf %10, %14 : vector<8x128xf32>
    %c0_7 = arith.constant 0 : index
    %c0_8 = arith.constant 0 : index
    %16 = vector.load %arg4[%c0_7, %c0_8] : memref<8x128xf32, #tpu.memory_space<vmem>>, vector<8x128xf32>
    tpu.vector_store %arg4[%c0_7, %c0_8], %15 {strides = array<i32>} : memref<8x128xf32, #tpu.memory_space<vmem>>, vector<8x128xf32>,
    return
  }
  func.func @transform_0(%arg0: i32) -> (i32, i32) {
    %c0_i32 = arith.constant 0 : i32
    %c0_i32_0 = arith.constant 0 : i32
    return %arg0, %c0_i32 : i32, i32
  }
  func.func @transform_1(%arg0: i32) -> (i32, i32) {
    %c0_i32 = arith.constant 0 : i32
    %c0_i32_0 = arith.constant 0 : i32
    %c0_i32_1 = arith.constant 0 : i32
    return %c0_i32, %c0_i32_0 : i32, i32
  }
  func.func @transform_2(%arg0: i32) -> (i32, i32) {
    %c0_i32 = arith.constant 0 : i32
    %c0_i32_0 = arith.constant 0 : i32
    %c0_i32_1 = arith.constant 0 : i32
    return %c0_i32, %c0_i32_0 : i32, i32
  }
  func.func @transform_3(%arg0: i32) -> (i32, i32) {
    %c0_i32 = arith.constant 0 : i32
    %c0_i32_0 = arith.constant 0 : i32
    return %arg0, %c0_i32 : i32, i32
  }
}

</mosaic_0001>

<bundles_post_ra>
// kernel: deep_logistic_regression.1
= control target key start
LH: loop header
LB: loop body
LE: loop exit
PB: predicated region body
PF: predicated region fallthrough
CT: control target
= control target key end

     0   :  { %8 = vsyncpa [#allocation3], 0  ;;  %v2433_v54 = vmov 1983009808   ;;  %v461_v56 = vlaneseq  ;;  %s3802_s0 = inlined_call_operand.vmem [shape: f32[2,3072], index: 0, kind: input, shape index: {}]   ;;  %s3803_s1 = inlined_call_operand.vmem [shape: f32[3072,128], index: 1, kind: input, shape index: {}]   ;;  %s3804_s2 = inlined_call_operand.vmem [shape: f32[1,128], index: 2, kind: input, shape index: {}]   ;;  %s3805_s3 = inlined_call_operand.hbm [shape: f32[2,128], index: 3, kind: output, shape index: {}]  }
   0x1   :  { %v55_v0 = vld [vmem:[%s3803_s1 + $0x80] sm:$0xff]  ;;  %v56_v1 = vld [vmem:[%s3803_s1 + $0x88] sm:$0xff]  ;;  %v57_v12 = vld [vmem:[%s3803_s1 + $0x90] sm:$0xff]  ;;  %v459_v55 = vunpack.c.l.s4 %v2433_v54 }
   0x2   :  { %v1981_v2 = vpack.c.bf16 %v56_v1, %v55_v0  ;;  %v39_v3 = vld [vmem:[%s3803_s1] sm:$0xff]  ;;  %v40_v4 = vld [vmem:[%s3803_s1 + $0x8] sm:$0xff]  ;;  %v58_v13 = vld [vmem:[%s3803_s1 + $0x98] sm:$0xff] }
   0x3   :  { %v87_v5 = vld [vmem:[%s3803_s1 + $0x180] sm:$0xff]  ;;  %v1983_v6 = vpack.c.bf16 %v40_v4, %v39_v3  ;;  %v88_v7 = vld [vmem:[%s3803_s1 + $0x188] sm:$0xff]  ;;  %v41_v14 = vld [vmem:[%s3803_s1 + $0x10] sm:$0xff]  ;;  %v1985_v15 = vpack.c.bf16 %v58_v13, %v57_v12 }
   0x4   :  { %v71_v8 = vld [vmem:[%s3803_s1 + $0x100] sm:$0xff]  ;;  %v72_v9 = vld [vmem:[%s3803_s1 + $0x108] sm:$0xff]  ;;  %1982 = vmatprep.subr.bf16.mxu0 %v1981_v2  ;;  %v2013_v10 = vpack.c.bf16 %v88_v7, %v87_v5  ;;  %v42_v16 = vld [vmem:[%s3803_s1 + $0x18] sm:$0xff]  ;;  %v460_v5 = vunpack.c.0.s8 %v459_v55 }
   0x5   :  { %v2015_v11 = vpack.c.bf16 %v72_v9, %v71_v8  ;;  %1984 = vmatpush3.bf16.msra.mxu0 %v1983_v6  ;;  %v89_v17 = vld [vmem:[%s3803_s1 + $0x190] sm:$0xff]  ;;  %v90_v18 = vld [vmem:[%s3803_s1 + $0x198] sm:$0xff]  ;;  %v1987_v19 = vpack.c.bf16 %v42_v16, %v41_v14  ;;  %v59_v23 = vld [vmem:[%s3803_s1 + $0xa0] sm:$0xff]  ;;  %v462_v6 = vshrl.u32 %v461_v56, 7 }
   0x6   :  { %2014 = vmatprep.subr.bf16.mxu1 %v2013_v10  ;;  %v2017_v20 = vpack.c.bf16 %v90_v18, %v89_v17  ;;  %v73_v21 = vld [vmem:[%s3803_s1 + $0x110] sm:$0xff]  ;;  %v74_v22 = vld [vmem:[%s3803_s1 + $0x118] sm:$0xff]  ;;  %1986 = vmatprep.subr.bf16.mxu0 %v1985_v15  ;;  %v60_v25 = vld [vmem:[%s3803_s1 + $0xa8] sm:$0xff] }
   0x7   :  { %2016 = vmatpush3.bf16.msra.mxu1 %v2015_v11  ;;  %v2019_v24 = vpack.c.bf16 %v74_v22, %v73_v21  ;;  %v43_v26 = vld [vmem:[%s3803_s1 + $0x20] sm:$0xff]  ;;  %v44_v27 = vld [vmem:[%s3803_s1 + $0x28] sm:$0xff]  ;;  %v1989_v28 = vpack.c.bf16 %v60_v25, %v59_v23  ;;  %v61_v35 = vld [vmem:[%s3803_s1 + $0xb0] sm:$0xff]  ;;  %v2631_v23 = vsub.s32 %v460_v5, %v462_v6 }
   0x8   :  { %2018 = vmatprep.subr.bf16.mxu1 %v2017_v20  ;;  %v91_v29 = vld [vmem:[%s3803_s1 + $0x1a0] sm:$0xff]  ;;  %v92_v30 = vld [vmem:[%s3803_s1 + $0x1a8] sm:$0xff]  ;;  %v1991_v32 = vpack.c.bf16 %v44_v27, %v43_v26  ;;  %v62_v36 = vld [vmem:[%s3803_s1 + $0xb8] sm:$0xff] }
   0x9   :  { %v75_v31 = vld [vmem:[%s3803_s1 + $0x120] sm:$0xff]  ;;  %1988 = vmatpush3.bf16.msra.mxu0 %v1987_v19  ;;  %v2021_v33 = vpack.c.bf16 %v92_v30, %v91_v29  ;;  %v76_v34 = vld [vmem:[%s3803_s1 + $0x128] sm:$0xff]  ;;  %v1993_v37 = vpack.c.bf16 %v62_v36, %v61_v35  ;;  %v45_v38 = vld [vmem:[%s3803_s1 + $0x30] sm:$0xff] }
   0xa   :  { %1990 = vmatprep.subr.bf16.mxu0 %v1989_v28  ;;  %v46_v39 = vld [vmem:[%s3803_s1 + $0x38] sm:$0xff]  ;;  %v93_v40 = vld [vmem:[%s3803_s1 + $0x1b0] sm:$0xff]  ;;  %v2023_v41 = vpack.c.bf16 %v76_v34, %v75_v31  ;;  %v63_v46 = vld [vmem:[%s3803_s1 + $0xc0] sm:$0xff] }
   0xb   :  { %2020 = vmatpush3.bf16.msra.mxu1 %v2019_v24  ;;  %v94_v42 = vld [vmem:[%s3803_s1 + $0x1b8] sm:$0xff]  ;;  %v77_v43 = vld [vmem:[%s3803_s1 + $0x130] sm:$0xff]  ;;  %v64_v47 = vld [vmem:[%s3803_s1 + $0xc8] sm:$0xff]  ;;  %v1995_v48 = vpack.c.bf16 %v46_v39, %v45_v38 }
   0xc   :  { %2022 = vmatprep.subr.bf16.mxu1 %v2021_v33  ;;  %v2025_v44 = vpack.c.bf16 %v94_v42, %v93_v40  ;;  %v78_v45 = vld [vmem:[%s3803_s1 + $0x138] sm:$0xff]  ;;  %v95_v49 = vld [vmem:[%s3803_s1 + $0x1c0] sm:$0xff]  ;;  %v96_v50 = vld [vmem:[%s3803_s1 + $0x1c8] sm:$0xff]  ;;  %v1997_v51 = vpack.c.bf16 %v64_v47, %v63_v46 }
   0xd   :  { %1992 = vmatpush3.bf16.msra.mxu0 %v1991_v32  ;;  %v47_v52 = vld [vmem:[%s3803_s1 + $0x40] sm:$0xff]  ;;  %v48_v53 = vld [vmem:[%s3803_s1 + $0x48] sm:$0xff]  ;;  %v2027_v57 = vpack.c.bf16 %v78_v45, %v77_v43  ;;  %v65_v58 = vld [vmem:[%s3803_s1 + $0xd0] sm:$0xff]  ;;  %v2029_v60 = vpack.c.bf16 %v96_v50, %v95_v49 }
   0xe   :  { %1994 = vmatprep.subr.bf16.mxu0 %v1993_v37  ;;  %v66_v59 = vld [vmem:[%s3803_s1 + $0xd8] sm:$0xff]  ;;  %v79_v61 = vld [vmem:[%s3803_s1 + $0x140] sm:$0xff]  ;;  %v80_v62 = vld [vmem:[%s3803_s1 + $0x148] sm:$0xff]  ;;  %v1999_v63 = vpack.c.bf16 %v48_v53, %v47_v52 }
   0xf   :  { %2024 = vmatpush3.bf16.msra.mxu1 %v2023_v41  ;;  %v97_v0 = vld [vmem:[%s3803_s1 + $0x1d0] sm:$0xff]  ;;  %v98_v1 = vld [vmem:[%s3803_s1 + $0x1d8] sm:$0xff]  ;;  %v2001_v2 = vpack.c.bf16 %v66_v59, %v65_v58  ;;  %v2031_v7 = vpack.c.bf16 %v80_v62, %v79_v61  ;;  %v67_v8 = vld [vmem:[%s3803_s1 + $0xe0] sm:$0xff] }
  0x10   :  { %2026 = vmatprep.subr.bf16.mxu1 %v2025_v44  ;;  %v49_v3 = vld [vmem:[%s3803_s1 + $0x50] sm:$0xff]  ;;  %v50_v4 = vld [vmem:[%s3803_s1 + $0x58] sm:$0xff]  ;;  %v68_v9 = vld [vmem:[%s3803_s1 + $0xe8] sm:$0xff]  ;;  %v2033_v10 = vpack.c.bf16 %v98_v1, %v97_v0 }
  0x11   :  { %1996 = vmatpush3.bf16.msra.mxu0 %v1995_v48  ;;  %v81_v11 = vld [vmem:[%s3803_s1 + $0x150] sm:$0xff]  ;;  %v82_v12 = vld [vmem:[%s3803_s1 + $0x158] sm:$0xff]  ;;  %v51_v13 = vld [vmem:[%s3803_s1 + $0x60] sm:$0xff]  ;;  %v2003_v14 = vpack.c.bf16 %v50_v4, %v49_v3  ;;  %v2005_v18 = vpack.c.bf16 %v68_v9, %v67_v8 }
  0x12   :  { %1998 = vmatprep.subr.bf16.mxu0 %v1997_v51  ;;  %v52_v15 = vld [vmem:[%s3803_s1 + $0x68] sm:$0xff]  ;;  %v99_v16 = vld [vmem:[%s3803_s1 + $0x1e0] sm:$0xff]  ;;  %v69_v21 = vld [vmem:[%s3803_s1 + $0xf0] sm:$0xff]  ;;  %v2035_v24 = vpack.c.bf16 %v82_v12, %v81_v11 }
  0x13   :  { %2028 = vmatpush3.bf16.msra.mxu1 %v2027_v57  ;;  %v100_v17 = vld [vmem:[%s3803_s1 + $0x1e8] sm:$0xff]  ;;  %v83_v19 = vld [vmem:[%s3803_s1 + $0x160] sm:$0xff]  ;;  %v70_v22 = vld [vmem:[%s3803_s1 + $0xf8] sm:$0xff]  ;;  %v2007_v29 = vpack.c.bf16 %v52_v15, %v51_v13 }
  0x14   :  { %2030 = vmatprep.subr.bf16.mxu1 %v2029_v60  ;;  %v84_v20 = vld [vmem:[%s3803_s1 + $0x168] sm:$0xff]  ;;  %v2037_v25 = vpack.c.bf16 %v100_v17, %v99_v16  ;;  %v101_v26 = vld [vmem:[%s3803_s1 + $0x1f0] sm:$0xff]  ;;  %v102_v30 = vld [vmem:[%s3803_s1 + $0x1f8] sm:$0xff]  ;;  %v2009_v33 = vpack.c.bf16 %v70_v22, %v69_v21 }
  0x15   :  { %2000 = vmatpush3.bf16.msra.mxu0 %v1999_v63  ;;  %v2369_v27 = vld [vmem:[%s3802_s0] ss:$48 sps:$4 sm:$0xff]   ;;  %v2373_v31 = vld [vmem:[%s3802_s0 + $0x4] ss:$48 sps:$4 sm:$0xff]   ;;  %v54_v35 = vld [vmem:[%s3803_s1 + $0x78] sm:$0xff]  ;;  %v2039_v38 = vpack.c.bf16 %v84_v20, %v83_v19  ;;  %v2041_v43 = vpack.c.bf16 %v102_v30, %v101_v26 }
  0x16   :  { %2002 = vmatprep.subr.bf16.mxu0 %v2001_v2  ;;  %v2371_v28 = vld [vmem:[%s3802_s0 + $0x60] ss:$48 sps:$4 sm:$0xff]   ;;  %v2374_v32 = vld [vmem:[%s3802_s0 + $0x64] ss:$48 sps:$4 sm:$0xff]   ;;  %v464_v36 = vrot.slane %v2369_v27, %v2631_v23  ;;  %v120_v40 = vld [vmem:[%s3803_s1 + $0x288] sm:$0xff]  ;;  %v471_v41 = vrot.slane %v2373_v31, %v2631_v23 }
  0x17   :  { %2032 = vmatpush3.bf16.msra.mxu1 %v2031_v7  ;;  %v53_v34 = vld [vmem:[%s3803_s1 + $0x70] sm:$0xff]  ;;  %v478_v37 = vrot.slane %v2371_v28, %v2631_v23  ;;  %v119_v39 = vld [vmem:[%s3803_s1 + $0x280] sm:$0xff]  ;;  %v485_v42 = vrot.slane %v2374_v32, %v2631_v23  ;;  %v86_v45 = vld [vmem:[%s3803_s1 + $0x178] sm:$0xff] }
  0x18   :  { %2034 = vmatprep.subr.bf16.mxu1 %v2033_v10  ;;  %v85_v44 = vld [vmem:[%s3803_s1 + $0x170] sm:$0xff]  ;;  %v2011_v47 = vpack.c.bf16 %v54_v35, %v53_v34  ;;  %v151_v49 = vld [vmem:[%s3803_s1 + $0x380] sm:$0xff]  ;;  %v152_v50 = vld [vmem:[%s3803_s1 + $0x388] sm:$0xff]  ;;  %v2045_v51 = vpack.c.bf16 %v120_v40, %v119_v39 }
  0x19   :  { %2004 = vmatpush3.bf16.msra.mxu0 %v2003_v14  ;;  %v487_v46 = vcombine.high %v464_v36, %v478_v37  ;;  %v489_v48 = vcombine.high %v471_v41, %v485_v42  ;;  %v103_v52 = vld [vmem:[%s3803_s1 + $0x200] sm:$0xff]  ;;  %v104_v53 = vld [vmem:[%s3803_s1 + $0x208] sm:$0xff]  ;;  %v2043_v54 = vpack.c.bf16 %v86_v45, %v85_v44  ;;  %v121_v55 = vld [vmem:[%s3803_s1 + $0x290] sm:$0xff]  ;;  %v486_v57 = vcombine.low %v464_v36, %v478_v37 }
  0x1a   :  { %2006 = vmatprep.subr.bf16.mxu0 %v2005_v18  ;;  %v122_v56 = vld [vmem:[%s3803_s1 + $0x298] sm:$0xff]  ;;  %v2077_v58 = vpack.c.bf16 %v152_v50, %v151_v49  ;;  %v135_v59 = vld [vmem:[%s3803_s1 + $0x300] sm:$0xff]  ;;  %v136_v60 = vld [vmem:[%s3803_s1 + $0x308] sm:$0xff]  ;;  %v2047_v61 = vpack.c.bf16 %v104_v53, %v103_v52  ;;  %v488_v0 = vcombine.low %v471_v41, %v485_v42 }
  0x1b   :  { %2036 = vmatpush3.bf16.msra.mxu1 %v2035_v24  ;;  %758 = vmatprep.mubr.f32.mxu0 %v487_v46  ;;  %v153_v62 = vld [vmem:[%s3803_s1 + $0x390] sm:$0xff]  ;;  %v154_v63 = vld [vmem:[%s3803_s1 + $0x398] sm:$0xff]  ;;  %v2049_v1 = vpack.c.bf16 %v122_v56, %v121_v55  ;;  %v2079_v4 = vpack.c.bf16 %v136_v60, %v135_v59  ;;  %v123_v5 = vld [vmem:[%s3803_s1 + $0x2a0] sm:$0xff] }
  0x1c   :  { %2038 = vmatprep.subr.bf16.mxu1 %v2037_v25  ;;  %828 = vmatprep.mubr.f32.mxu1 %v489_v48  ;;  %v105_v2 = vld [vmem:[%s3803_s1 + $0x210] sm:$0xff]  ;;  %v106_v3 = vld [vmem:[%s3803_s1 + $0x218] sm:$0xff]  ;;  %v124_v6 = vld [vmem:[%s3803_s1 + $0x2a8] sm:$0xff]  ;;  %v2081_v7 = vpack.c.bf16 %v154_v63, %v153_v62 }
  0x1d   :  { %2008 = vmatpush3.bf16.msra.mxu0 %v2007_v29  ;;  %v137_v8 = vld [vmem:[%s3803_s1 + $0x310] sm:$0xff]  ;;  %v138_v9 = vld [vmem:[%s3803_s1 + $0x318] sm:$0xff]  ;;  %v2051_v10 = vpack.c.bf16 %v106_v3, %v105_v2  ;;  %v155_v11 = vld [vmem:[%s3803_s1 + $0x3a0] sm:$0xff]  ;;  %v2053_v13 = vpack.c.bf16 %v124_v6, %v123_v5 }
  0x1e   :  { %2010 = vmatprep.subr.bf16.mxu0 %v2009_v33  ;;  %v156_v12 = vld [vmem:[%s3803_s1 + $0x3a8] sm:$0xff]  ;;  %v107_v14 = vld [vmem:[%s3803_s1 + $0x220] sm:$0xff]  ;;  %v2083_v16 = vpack.c.bf16 %v138_v9, %v137_v8  ;;  %v125_v17 = vld [vmem:[%s3803_s1 + $0x2b0] sm:$0xff] }
  0x1f   :  { %2040 = vmatpush3.bf16.msra.mxu1 %v2039_v38  ;;  %v108_v15 = vld [vmem:[%s3803_s1 + $0x228] sm:$0xff]  ;;  %v126_v18 = vld [vmem:[%s3803_s1 + $0x2b8] sm:$0xff]  ;;  %v2085_v19 = vpack.c.bf16 %v156_v12, %v155_v11  ;;  %v139_v20 = vld [vmem:[%s3803_s1 + $0x320] sm:$0xff] }
  0x20   :  { %2042 = vmatprep.subr.bf16.mxu1 %v2041_v43  ;;  %v140_v21 = vld [vmem:[%s3803_s1 + $0x328] sm:$0xff]  ;;  %v2055_v22 = vpack.c.bf16 %v108_v15, %v107_v14  ;;  %v157_v24 = vld [vmem:[%s3803_s1 + $0x3b0] sm:$0xff]  ;;  %v158_v25 = vld [vmem:[%s3803_s1 + $0x3b8] sm:$0xff]  ;;  %v2057_v26 = vpack.c.bf16 %v126_v18, %v125_v17 }
  0x21   :  { %2012 = vmatpush3.bf16.msra.mxu0 %v2011_v47  ;;  %v109_v27 = vld [vmem:[%s3803_s1 + $0x230] sm:$0xff]  ;;  %v110_v28 = vld [vmem:[%s3803_s1 + $0x238] sm:$0xff]  ;;  %v2087_v29 = vpack.c.bf16 %v140_v21, %v139_v20  ;;  %v127_v30 = vld [vmem:[%s3803_s1 + $0x2c0] sm:$0xff]  ;;  %v2089_v32 = vpack.c.bf16 %v158_v25, %v157_v24 }
  0x22   :  { %2046 = vmatprep.subr.bf16.mxu0 %v2045_v51  ;;  %v128_v31 = vld [vmem:[%s3803_s1 + $0x2c8] sm:$0xff]  ;;  %v141_v33 = vld [vmem:[%s3803_s1 + $0x330] sm:$0xff]  ;;  %v142_v34 = vld [vmem:[%s3803_s1 + $0x338] sm:$0xff]  ;;  %v2059_v36 = vpack.c.bf16 %v110_v28, %v109_v27 }
  0x23   :  { %2044 = vmatpush3.bf16.msra.mxu1 %v2043_v54  ;;  %v111_v35 = vld [vmem:[%s3803_s1 + $0x240] sm:$0xff]  ;;  %v112_v37 = vld [vmem:[%s3803_s1 + $0x248] sm:$0xff]  ;;  %v2061_v40 = vpack.c.bf16 %v128_v31, %v127_v30  ;;  %v129_v43 = vld [vmem:[%s3803_s1 + $0x2d0] sm:$0xff]  ;;  %v2091_v45 = vpack.c.bf16 %v142_v34, %v141_v33 }
  0x24   :  { %759 = vmatmul.mubr.f32.vlgmr.msra.gmra.mrb[0].mxu0 %v486_v57  ;;  %2078 = vmatprep.subr.bf16.mxu1 %v2077_v58  ;;  %v159_v38 = vld [vmem:[%s3803_s1 + $0x3c0] sm:$0xff]  ;;  %v160_v39 = vld [vmem:[%s3803_s1 + $0x3c8] sm:$0xff]  ;;  %v130_v44 = vld [vmem:[%s3803_s1 + $0x2d8] sm:$0xff]  ;;  %v2063_v50 = vpack.c.bf16 %v112_v37, %v111_v35 }
  0x25   :  { %2048 = vmatpush3.bf16.msra.mxu0 %v2047_v61  ;;  %v143_v41 = vld [vmem:[%s3803_s1 + $0x340] sm:$0xff]  ;;  %v144_v42 = vld [vmem:[%s3803_s1 + $0x348] sm:$0xff]  ;;  %v2093_v46 = vpack.c.bf16 %v160_v39, %v159_v38  ;;  %v161_v47 = vld [vmem:[%s3803_s1 + $0x3d0] sm:$0xff]  ;;  %v2065_v54 = vpack.c.bf16 %v130_v44, %v129_v43 }
  0x26   :  { %829 = vmatmul.mubr.f32.vlgmr.msra.gmra.mrb[0].mxu1 %v488_v0  ;;  %2050 = vmatprep.subr.bf16.mxu0 %v2049_v1  ;;  %v2375_v48 = vld [vmem:[%s3802_s0 + $0x8] ss:$48 sps:$4 sm:$0xff]   ;;  %v2379_v52 = vld [vmem:[%s3802_s0 + $0xc] ss:$48 sps:$4 sm:$0xff]   ;;  %v113_v55 = vld [vmem:[%s3803_s1 + $0x250] sm:$0xff]  ;;  %v2095_v59 = vpack.c.bf16 %v144_v42, %v143_v41 }
  0x27   :  { %2080 = vmatpush3.bf16.msra.mxu1 %v2079_v4  ;;  %v2377_v49 = vld [vmem:[%s3802_s0 + $0x68] ss:$48 sps:$4 sm:$0xff]   ;;  %v2380_v53 = vld [vmem:[%s3802_s0 + $0x6c] ss:$48 sps:$4 sm:$0xff]   ;;  %v2818_v57 = vrot.slane %v2375_v48, %v2631_v23  ;;  %v131_v60 = vld [vmem:[%s3803_s1 + $0x2e0] sm:$0xff]  ;;  %v2830_v62 = vrot.slane %v2379_v52, %v2631_v23 }
  0x28   :  { %2082 = vmatprep.subr.bf16.mxu1 %v2081_v7  ;;  %v162_v51 = vld [vmem:[%s3803_s1 + $0x3d8] sm:$0xff]  ;;  %v2821_v58 = vrot.slane %v2377_v49, %v2631_v23  ;;  %v132_v61 = vld [vmem:[%s3803_s1 + $0x2e8] sm:$0xff]  ;;  %v2833_v63 = vrot.slane %v2380_v53, %v2631_v23  ;;  %v145_v1 = vld [vmem:[%s3803_s1 + $0x350] sm:$0xff] }
  0x29   :  { %2052 = vmatpush3.bf16.msra.mxu0 %v2051_v10  ;;  %v114_v56 = vld [vmem:[%s3803_s1 + $0x258] sm:$0xff]  ;;  %v2097_v0 = vpack.c.bf16 %v162_v51, %v161_v47  ;;  %v163_v5 = vld [vmem:[%s3803_s1 + $0x3e0] sm:$0xff]  ;;  %v164_v6 = vld [vmem:[%s3803_s1 + $0x3e8] sm:$0xff]  ;;  %v2069_v8 = vpack.c.bf16 %v132_v61, %v131_v60 }
  0x2a   :  { %2054 = vmatprep.subr.bf16.mxu0 %v2053_v13  ;;  %v146_v2 = vld [vmem:[%s3803_s1 + $0x358] sm:$0xff]  ;;  %v523_v3 = vcombine.high %v2818_v57, %v2821_v58  ;;  %v2067_v4 = vpack.c.bf16 %v114_v56, %v113_v55  ;;  %v525_v7 = vcombine.high %v2830_v62, %v2833_v63  ;;  %v115_v9 = vld [vmem:[%s3803_s1 + $0x260] sm:$0xff]  ;;  %v116_v10 = vld [vmem:[%s3803_s1 + $0x268] sm:$0xff]  ;;  %v2101_v14 = vpack.c.bf16 %v164_v6, %v163_v5 }
  0x2b   :  { %2084 = vmatpush3.bf16.msra.mxu1 %v2083_v16  ;;  %v2099_v11 = vpack.c.bf16 %v146_v2, %v145_v1  ;;  %v133_v12 = vld [vmem:[%s3803_s1 + $0x2f0] sm:$0xff]  ;;  %v134_v13 = vld [vmem:[%s3803_s1 + $0x2f8] sm:$0xff]  ;;  %v147_v15 = vld [vmem:[%s3803_s1 + $0x360] sm:$0xff]  ;;  %v2071_v17 = vpack.c.bf16 %v116_v10, %v115_v9  ;;  %v522_v39 = vcombine.low %v2818_v57, %v2821_v58 }
  0x2c   :  { %2086 = vmatprep.subr.bf16.mxu1 %v2085_v19  ;;  %898 = vmatprep.mubr.f32.mxu0 %v523_v3  ;;  %v148_v16 = vld [vmem:[%s3803_s1 + $0x368] sm:$0xff]  ;;  %v165_v18 = vld [vmem:[%s3803_s1 + $0x3f0] sm:$0xff]  ;;  %v166_v19 = vld [vmem:[%s3803_s1 + $0x3f8] sm:$0xff]  ;;  %v2073_v20 = vpack.c.bf16 %v134_v13, %v133_v12 }
  0x2d   :  { %2056 = vmatpush3.bf16.msra.mxu0 %v2055_v22  ;;  %968 = vmatprep.mubr.f32.mxu1 %v525_v7  ;;  %v117_v21 = vld [vmem:[%s3803_s1 + $0x270] sm:$0xff]  ;;  %v118_v22 = vld [vmem:[%s3803_s1 + $0x278] sm:$0xff]  ;;  %v2103_v24 = vpack.c.bf16 %v148_v16, %v147_v15  ;;  %v183_v25 = vld [vmem:[%s3803_s1 + $0x480] sm:$0xff]  ;;  %v2105_v27 = vpack.c.bf16 %v166_v19, %v165_v18 }
  0x2e   :  { %2058 = vmatprep.subr.bf16.mxu0 %v2057_v26  ;;  %v184_v26 = vld [vmem:[%s3803_s1 + $0x488] sm:$0xff]  ;;  %v149_v28 = vld [vmem:[%s3803_s1 + $0x370] sm:$0xff]  ;;  %v2075_v30 = vpack.c.bf16 %v118_v22, %v117_v21  ;;  %v215_v31 = vld [vmem:[%s3803_s1 + $0x580] sm:$0xff] }
  0x2f   :  { %2088 = vmatpush3.bf16.msra.mxu1 %v2087_v29  ;;  %v150_v29 = vld [vmem:[%s3803_s1 + $0x378] sm:$0xff]  ;;  %v2109_v33 = vpack.c.bf16 %v184_v26, %v183_v25  ;;  %v167_v34 = vld [vmem:[%s3803_s1 + $0x400] sm:$0xff]  ;;  %v168_v35 = vld [vmem:[%s3803_s1 + $0x408] sm:$0xff] }
  0x30   :  { %2090 = vmatprep.subr.bf16.mxu1 %v2089_v32  ;;  %v216_v32 = vld [vmem:[%s3803_s1 + $0x588] sm:$0xff]  ;;  %v185_v37 = vld [vmem:[%s3803_s1 + $0x490] sm:$0xff]  ;;  %v186_v38 = vld [vmem:[%s3803_s1 + $0x498] sm:$0xff]  ;;  %v2111_v43 = vpack.c.bf16 %v168_v35, %v167_v34 }
  0x31   :  { %2060 = vmatpush3.bf16.msra.mxu0 %v2059_v36  ;;  %v2107_v36 = vpack.c.bf16 %v150_v29, %v149_v28  ;;  %v199_v41 = vld [vmem:[%s3803_s1 + $0x500] sm:$0xff]  ;;  %v200_v42 = vld [vmem:[%s3803_s1 + $0x508] sm:$0xff]  ;;  %v217_v44 = vld [vmem:[%s3803_s1 + $0x590] sm:$0xff]  ;;  %v2113_v47 = vpack.c.bf16 %v186_v38, %v185_v37 }
  0x32   :  { %2062 = vmatprep.subr.bf16.mxu0 %v2061_v40  ;;  %v2141_v40 = vpack.c.bf16 %v216_v32, %v215_v31  ;;  %v169_v48 = vld [vmem:[%s3803_s1 + $0x410] sm:$0xff]  ;;  %v170_v49 = vld [vmem:[%s3803_s1 + $0x418] sm:$0xff]  ;;  %v187_v51 = vld [vmem:[%s3803_s1 + $0x4a0] sm:$0xff] }
  0x33   :  { %2092 = vmatpush3.bf16.msra.mxu1 %v2091_v45  ;;  %v218_v45 = vld [vmem:[%s3803_s1 + $0x598] sm:$0xff]  ;;  %v188_v52 = vld [vmem:[%s3803_s1 + $0x4a8] sm:$0xff]  ;;  %v171_v56 = vld [vmem:[%s3803_s1 + $0x420] sm:$0xff]  ;;  %v2115_v57 = vpack.c.bf16 %v170_v49, %v169_v48 }
  0x34   :  { %2094 = vmatprep.subr.bf16.mxu1 %v2093_v46  ;;  %v524_v46 = vcombine.low %v2830_v62, %v2833_v63  ;;  %v2145_v53 = vpack.c.bf16 %v218_v45, %v217_v44  ;;  %v202_v55 = vld [vmem:[%s3803_s1 + $0x518] sm:$0xff]  ;;  %v172_v58 = vld [vmem:[%s3803_s1 + $0x428] sm:$0xff]  ;;  %v2117_v61 = vpack.c.bf16 %v188_v52, %v187_v51  ;;  %v203_v62 = vld [vmem:[%s3803_s1 + $0x520] sm:$0xff] }
  0x35   :  { %2064 = vmatpush3.bf16.msra.mxu0 %v2063_v50  ;;  %v2143_v50 = vpack.c.bf16 %v200_v42, %v199_v41  ;;  %v220_v60 = vld [vmem:[%s3803_s1 + $0x5a8] sm:$0xff]  ;;  %v190_v1 = vld [vmem:[%s3803_s1 + $0x4b8] sm:$0xff]  ;;  %v2381_v5 = vld [vmem:[%s3802_s0 + $0x10] ss:$48 sps:$4 sm:$0xff]   ;;  %v2119_v7 = vpack.c.bf16 %v172_v58, %v171_v56 }
  0x36   :  { %2066 = vmatprep.subr.bf16.mxu0 %v2065_v54  ;;  %v201_v54 = vld [vmem:[%s3803_s1 + $0x510] sm:$0xff]  ;;  %v204_v63 = vld [vmem:[%s3803_s1 + $0x528] sm:$0xff]  ;;  %v174_v13 = vld [vmem:[%s3803_s1 + $0x438] sm:$0xff] }
  0x37   :  { %2096 = vmatpush3.bf16.msra.mxu1 %v2095_v59  ;;  %v219_v59 = vld [vmem:[%s3803_s1 + $0x5a0] sm:$0xff]  ;;  %v2147_v2 = vpack.c.bf16 %v202_v55, %v201_v54  ;;  %v173_v12 = vld [vmem:[%s3803_s1 + $0x430] sm:$0xff]  ;;  %v2151_v16 = vpack.c.bf16 %v204_v63, %v203_v62  ;;  %v192_v18 = vld [vmem:[%s3803_s1 + $0x4c8] sm:$0xff] }
  0x38   :  { %2098 = vmatprep.subr.bf16.mxu1 %v2097_v0  ;;  %v189_v0 = vld [vmem:[%s3803_s1 + $0x4b0] sm:$0xff]  ;;  %v2149_v3 = vpack.c.bf16 %v220_v60, %v219_v59  ;;  %v2123_v26 = vpack.c.bf16 %v174_v13, %v173_v12  ;;  %v224_v28 = vld [vmem:[%s3803_s1 + $0x5c8] sm:$0xff]  ;;  %v175_v31 = vld [vmem:[%s3803_s1 + $0x440] sm:$0xff] }
  0x39   :  { %2068 = vmatpush3.bf16.msra.mxu0 %v2067_v4  ;;  %v221_v4 = vld [vmem:[%s3803_s1 + $0x5b0] sm:$0xff]  ;;  %v176_v32 = vld [vmem:[%s3803_s1 + $0x448] sm:$0xff]  ;;  %v194_v35 = vld [vmem:[%s3803_s1 + $0x4d8] sm:$0xff] }
  0x3a   :  { %2070 = vmatprep.subr.bf16.mxu0 %v2069_v8  ;;  %v2383_v6 = vld [vmem:[%s3802_s0 + $0x70] ss:$48 sps:$4 sm:$0xff]   ;;  %v222_v8 = vld [vmem:[%s3803_s1 + $0x5b8] sm:$0xff]  ;;  %v2385_v9 = vld [vmem:[%s3802_s0 + $0x14] ss:$48 sps:$4 sm:$0xff]  }
  0x3b   :  { %2100 = vmatpush3.bf16.msra.mxu1 %v2099_v11  ;;  %v2386_v10 = vld [vmem:[%s3802_s0 + $0x74] ss:$48 sps:$4 sm:$0xff]   ;;  %v2121_v11 = vpack.c.bf16 %v190_v1, %v189_v0  ;;  %v2997_v15 = vrot.slane %v2383_v6, %v2631_v23  ;;  %v3006_v19 = vrot.slane %v2385_v9, %v2631_v23  ;;  %v2153_v21 = vpack.c.bf16 %v222_v8, %v221_v4  ;;  %v208_v38 = vld [vmem:[%s3803_s1 + $0x548] sm:$0xff]  ;;  %v226_v41 = vld [vmem:[%s3803_s1 + $0x5d8] sm:$0xff] }
  0x3c   :  { %2102 = vmatprep.subr.bf16.mxu1 %v2101_v14  ;;  %v2994_v14 = vrot.slane %v2381_v5, %v2631_v23  ;;  %v205_v22 = vld [vmem:[%s3803_s1 + $0x530] sm:$0xff]  ;;  %v207_v37 = vld [vmem:[%s3803_s1 + $0x540] sm:$0xff]  ;;  %v178_v44 = vld [vmem:[%s3803_s1 + $0x458] sm:$0xff] }
  0x3d   :  { %2072 = vmatpush3.bf16.msra.mxu0 %v2071_v17  ;;  %v191_v17 = vld [vmem:[%s3803_s1 + $0x4c0] sm:$0xff]  ;;  %v193_v34 = vld [vmem:[%s3803_s1 + $0x4d0] sm:$0xff]  ;;  %v2159_v45 = vpack.c.bf16 %v208_v38, %v207_v37  ;;  %v180_v56 = vld [vmem:[%s3803_s1 + $0x468] sm:$0xff] }
  0x3e   :  { %2074 = vmatprep.subr.bf16.mxu0 %v2073_v20  ;;  %v3009_v20 = vrot.slane %v2386_v10, %v2631_v23  ;;  %v559_v25 = vcombine.high %v2994_v14, %v2997_v15  ;;  %v2129_v42 = vpack.c.bf16 %v194_v35, %v193_v34  ;;  %v209_v49 = vld [vmem:[%s3803_s1 + $0x550] sm:$0xff]  ;;  %v227_v52 = vld [vmem:[%s3803_s1 + $0x5e0] sm:$0xff]  ;;  %v198_v59 = vld [vmem:[%s3803_s1 + $0x4f8] sm:$0xff] }
  0x3f   :  { %2104 = vmatpush3.bf16.msra.mxu1 %v2103_v24  ;;  %v206_v24 = vld [vmem:[%s3803_s1 + $0x538] sm:$0xff]  ;;  %v179_v55 = vld [vmem:[%s3803_s1 + $0x460] sm:$0xff]  ;;  %v197_v58 = vld [vmem:[%s3803_s1 + $0x4f0] sm:$0xff] }
  0x40   :  { %2106 = vmatprep.subr.bf16.mxu1 %v2105_v27  ;;  %v223_v27 = vld [vmem:[%s3803_s1 + $0x5c0] sm:$0xff]  ;;  %v561_v29 = vcombine.high %v3006_v19, %v3009_v20  ;;  %v212_v62 = vld [vmem:[%s3803_s1 + $0x568] sm:$0xff]  ;;  %v2135_v63 = vpack.c.bf16 %v180_v56, %v179_v55  ;;  %v229_v0 = vld [vmem:[%s3803_s1 + $0x5f0] sm:$0xff]  ;;  %v560_v34 = vcombine.low %v3006_v19, %v3009_v20 }
  0x41   :  { %2076 = vmatpush3.bf16.msra.mxu0 %v2075_v30  ;;  %v2125_v30 = vpack.c.bf16 %v192_v18, %v191_v17  ;;  %v230_v1 = vld [vmem:[%s3803_s1 + $0x5f8] sm:$0xff]  ;;  %v247_v6 = vld [vmem:[%s3803_s1 + $0x680] sm:$0xff]  ;;  %v213_v9 = vld [vmem:[%s3803_s1 + $0x570] sm:$0xff] }
  0x42   :  { %2110 = vmatprep.subr.bf16.mxu0 %v2109_v33  ;;  %v2155_v33 = vpack.c.bf16 %v206_v24, %v205_v22  ;;  %v182_v4 = vld [vmem:[%s3803_s1 + $0x478] sm:$0xff]  ;;  %v2169_v8 = vpack.c.bf16 %v230_v1, %v229_v0  ;;  %v232_v13 = vld [vmem:[%s3803_s1 + $0x608] sm:$0xff]  ;;  %v249_v24 = vld [vmem:[%s3803_s1 + $0x690] sm:$0xff] }
  0x43   :  { %2108 = vmatpush3.bf16.msra.mxu1 %v2107_v36  ;;  %v2157_v36 = vpack.c.bf16 %v224_v28, %v223_v27  ;;  %v214_v10 = vld [vmem:[%s3803_s1 + $0x578] sm:$0xff]  ;;  %v280_v17 = vld [vmem:[%s3803_s1 + $0x788] sm:$0xff]  ;;  %v558_v27 = vcombine.low %v2994_v14, %v2997_v15  ;;  %v251_v19 = vld [vmem:[%s3803_s1 + $0x6a0] sm:$0xff] }
  0x44   :  { %899 = vmatmul.mubr.f32.vlgmr.msra.gmra.mrb[2].mxu0 %v522_v39  ;;  %2142 = vmatprep.subr.bf16.mxu1 %v2141_v40  ;;  %v2127_v39 = vpack.c.bf16 %v176_v32, %v175_v31  ;;  %v225_v40 = vld [vmem:[%s3803_s1 + $0x5d0] sm:$0xff]  ;;  %v264_v22 = vld [vmem:[%s3803_s1 + $0x708] sm:$0xff]  ;;  %v234_v37 = vld [vmem:[%s3803_s1 + $0x618] sm:$0xff] }
  0x45   :  { %2112 = vmatpush3.bf16.msra.mxu0 %v2111_v43  ;;  %1038 = vmatprep.mubr.f32.mxu0 %v559_v25  ;;  %v177_v43 = vld [vmem:[%s3803_s1 + $0x450] sm:$0xff]  ;;  %v2161_v48 = vpack.c.bf16 %v226_v41, %v225_v40  ;;  %v250_v25 = vld [vmem:[%s3803_s1 + $0x698] sm:$0xff]  ;;  %v252_v20 = vld [vmem:[%s3803_s1 + $0x6a8] sm:$0xff] }
  0x46   :  { %969 = vmatmul.mubr.f32.vlgmr.msra.gmra.mrb[2].mxu1 %v524_v46  ;;  %2114 = vmatprep.subr.bf16.mxu0 %v2113_v47  ;;  %v195_v46 = vld [vmem:[%s3803_s1 + $0x4e0] sm:$0xff]  ;;  %v196_v47 = vld [vmem:[%s3803_s1 + $0x4e8] sm:$0xff]  ;;  %v2131_v51 = vpack.c.bf16 %v178_v44, %v177_v43  ;;  %v2177_v35 = vpack.c.bf16 %v250_v25, %v249_v24  ;;  %v265_v44 = vld [vmem:[%s3803_s1 + $0x710] sm:$0xff] }
  0x47   :  { %2144 = vmatpush3.bf16.msra.mxu1 %v2143_v50  ;;  %1108 = vmatprep.mubr.f32.mxu1 %v561_v29  ;;  %v210_v50 = vld [vmem:[%s3803_s1 + $0x558] sm:$0xff]  ;;  %v2133_v54 = vpack.c.bf16 %v196_v47, %v195_v46  ;;  %v281_v29 = vld [vmem:[%s3803_s1 + $0x790] sm:$0xff]  ;;  %v272_v24 = vld [vmem:[%s3803_s1 + $0x748] sm:$0xff] }
  0x48   :  { %2146 = vmatprep.subr.bf16.mxu1 %v2145_v53  ;;  %v228_v53 = vld [vmem:[%s3803_s1 + $0x5e8] sm:$0xff]  ;;  %v253_v55 = vld [vmem:[%s3803_s1 + $0x6b0] sm:$0xff]  ;;  %v254_v56 = vld [vmem:[%s3803_s1 + $0x6b8] sm:$0xff] }
  0x49   :  { %2116 = vmatpush3.bf16.msra.mxu0 %v2115_v57  ;;  %v2163_v57 = vpack.c.bf16 %v210_v50, %v209_v49  ;;  %v2165_v60 = vpack.c.bf16 %v228_v53, %v227_v52  ;;  %v2389_v31 = vld [vmem:[%s3802_s0 + $0x78] ss:$48 sps:$4 sm:$0xff]   ;;  %v2391_v14 = vld [vmem:[%s3802_s0 + $0x1c] ss:$48 sps:$4 sm:$0xff]   ;;  %v235_v52 = vld [vmem:[%s3803_s1 + $0x620] sm:$0xff] }
  0x4a   :  { %2118 = vmatprep.subr.bf16.mxu0 %v2117_v61  ;;  %v211_v61 = vld [vmem:[%s3803_s1 + $0x560] sm:$0xff]  ;;  %v2392_v15 = vld [vmem:[%s3802_s0 + $0x7c] ss:$48 sps:$4 sm:$0xff]   ;;  %v3182_v41 = vrot.slane %v2391_v14, %v2631_v23  ;;  %v237_v0 = vld [vmem:[%s3803_s1 + $0x630] sm:$0xff] }
  0x4b   :  { %2148 = vmatpush3.bf16.msra.mxu1 %v2147_v2  ;;  %v2137_v2 = vpack.c.bf16 %v198_v59, %v197_v58  ;;  %v2167_v5 = vpack.c.bf16 %v212_v62, %v211_v61  ;;  %v284_v49 = vld [vmem:[%s3803_s1 + $0x7a8] sm:$0xff]  ;;  %v267_v58 = vld [vmem:[%s3803_s1 + $0x720] sm:$0xff]  ;;  %v285_v61 = vld [vmem:[%s3803_s1 + $0x7b0] sm:$0xff] }
  0x4c   :  { %2150 = vmatprep.subr.bf16.mxu1 %v2149_v3  ;;  %v181_v3 = vld [vmem:[%s3803_s1 + $0x470] sm:$0xff]  ;;  %v236_v53 = vld [vmem:[%s3803_s1 + $0x628] sm:$0xff]  ;;  %v286_v62 = vld [vmem:[%s3803_s1 + $0x7b8] sm:$0xff] }
  0x4d   :  { %2120 = vmatpush3.bf16.msra.mxu0 %v2119_v7  ;;  %v248_v7 = vld [vmem:[%s3803_s1 + $0x688] sm:$0xff]  ;;  %v2139_v12 = vpack.c.bf16 %v182_v4, %v181_v3  ;;  %v238_v1 = vld [vmem:[%s3803_s1 + $0x638] sm:$0xff]  ;;  %v255_v3 = vld [vmem:[%s3803_s1 + $0x6c0] sm:$0xff] }
  0x4e   :  { %2122 = vmatprep.subr.bf16.mxu0 %v2121_v11  ;;  %v231_v11 = vld [vmem:[%s3803_s1 + $0x600] sm:$0xff]  ;;  %v2173_v18 = vpack.c.bf16 %v248_v7, %v247_v6  ;;  %v268_v59 = vld [vmem:[%s3803_s1 + $0x728] sm:$0xff]  ;;  %v269_v6 = vld [vmem:[%s3803_s1 + $0x730] sm:$0xff] }
  0x4f   :  { %2152 = vmatpush3.bf16.msra.mxu1 %v2151_v16  ;;  %v279_v16 = vld [vmem:[%s3803_s1 + $0x780] sm:$0xff]  ;;  %v2175_v32 = vpack.c.bf16 %v232_v13, %v231_v11  ;;  %v256_v4 = vld [vmem:[%s3803_s1 + $0x6c8] sm:$0xff]  ;;  %v270_v7 = vld [vmem:[%s3803_s1 + $0x738] sm:$0xff] }
  0x50   :  { %2154 = vmatprep.subr.bf16.mxu1 %v2153_v21  ;;  %v263_v21 = vld [vmem:[%s3803_s1 + $0x700] sm:$0xff]  ;;  %v2205_v28 = vpack.c.bf16 %v280_v17, %v279_v16  ;;  %v2189_v11 = vpack.c.bf16 %v256_v4, %v255_v3  ;;  %v240_v13 = vld [vmem:[%s3803_s1 + $0x648] sm:$0xff]  ;;  %v2219_v16 = vpack.c.bf16 %v270_v7, %v269_v6  ;;  %v257_v17 = vld [vmem:[%s3803_s1 + $0x6d0] sm:$0xff] }
  0x51   :  { %2124 = vmatpush3.bf16.msra.mxu0 %v2123_v26  ;;  %v2171_v26 = vpack.c.bf16 %v214_v10, %v213_v9  ;;  %v2207_v40 = vpack.c.bf16 %v264_v22, %v263_v21  ;;  %v287_v9 = vld [vmem:[%s3803_s1 + $0x7c0] sm:$0xff]  ;;  %v288_v10 = vld [vmem:[%s3803_s1 + $0x7c8] sm:$0xff] }
  0x52   :  { %2126 = vmatprep.subr.bf16.mxu0 %v2125_v30  ;;  %v2387_v30 = vld [vmem:[%s3802_s0 + $0x18] ss:$48 sps:$4 sm:$0xff]   ;;  %v2221_v21 = vpack.c.bf16 %v288_v10, %v287_v9  ;;  %v271_v22 = vld [vmem:[%s3803_s1 + $0x740] sm:$0xff]  ;;  %v313_v10 = vld [vmem:[%s3803_s1 + $0x890] sm:$0xff] }
  0x53   :  { %2156 = vmatpush3.bf16.msra.mxu1 %v2155_v33  ;;  %v282_v33 = vld [vmem:[%s3803_s1 + $0x798] sm:$0xff]  ;;  %v3170_v38 = vrot.slane %v2387_v30, %v2631_v23  ;;  %v344_v3 = vld [vmem:[%s3803_s1 + $0x988] sm:$0xff]  ;;  %v295_v7 = vld [vmem:[%s3803_s1 + $0x800] sm:$0xff] }
  0x54   :  { %2158 = vmatprep.subr.bf16.mxu1 %v2157_v36  ;;  %v233_v36 = vld [vmem:[%s3803_s1 + $0x610] sm:$0xff]  ;;  %v2209_v43 = vpack.c.bf16 %v282_v33, %v281_v29  ;;  %v242_v30 = vld [vmem:[%s3803_s1 + $0x658] sm:$0xff]  ;;  %v260_v33 = vld [vmem:[%s3803_s1 + $0x6e8] sm:$0xff] }
  0x55   :  { %2128 = vmatpush3.bf16.msra.mxu0 %v2127_v39  ;;  %v3173_v39 = vrot.slane %v2389_v31, %v2631_v23  ;;  %v2179_v47 = vpack.c.bf16 %v234_v37, %v233_v36  ;;  %v241_v29 = vld [vmem:[%s3803_s1 + $0x650] sm:$0xff]  ;;  %v2223_v31 = vpack.c.bf16 %v272_v24, %v271_v22  ;;  %v244_v37 = vld [vmem:[%s3803_s1 + $0x668] sm:$0xff] }
  0x56   :  { %2130 = vmatprep.subr.bf16.mxu0 %v2129_v42  ;;  %v3185_v42 = vrot.slane %v2392_v15, %v2631_v23  ;;  %v273_v15 = vld [vmem:[%s3803_s1 + $0x750] sm:$0xff]  ;;  %v2195_v36 = vpack.c.bf16 %v242_v30, %v241_v29  ;;  %v315_v30 = vld [vmem:[%s3803_s1 + $0x8a0] sm:$0xff] }
  0x57   :  { %2160 = vmatpush3.bf16.msra.mxu1 %v2159_v45  ;;  %v266_v45 = vld [vmem:[%s3803_s1 + $0x718] sm:$0xff]  ;;  %v595_v46 = vcombine.high %v3170_v38, %v3173_v39  ;;  %v345_v24 = vld [vmem:[%s3803_s1 + $0x990] sm:$0xff] }
  0x58   :  { %2162 = vmatprep.subr.bf16.mxu1 %v2161_v48  ;;  %v283_v48 = vld [vmem:[%s3803_s1 + $0x7a0] sm:$0xff]  ;;  %v597_v50 = vcombine.high %v3182_v41, %v3185_v42 }
  0x59   :  { %2132 = vmatpush3.bf16.msra.mxu0 %v2131_v51  ;;  %v2181_v51 = vpack.c.bf16 %v252_v20, %v251_v19  ;;  %v292_v19 = vld [vmem:[%s3803_s1 + $0x7e8] sm:$0xff] }
  0x5a   :  { %2134 = vmatprep.subr.bf16.mxu0 %v2133_v54  ;;  %v2211_v54 = vpack.c.bf16 %v266_v45, %v265_v44  ;;  %v262_v44 = vld [vmem:[%s3803_s1 + $0x6f8] sm:$0xff] }
  0x5b   :  { %2164 = vmatpush3.bf16.msra.mxu1 %v2163_v57  ;;  %v2213_v57 = vpack.c.bf16 %v284_v49, %v283_v48  ;;  %v276_v48 = vld [vmem:[%s3803_s1 + $0x768] sm:$0xff]  ;;  %v293_v49 = vld [vmem:[%s3803_s1 + $0x7f0] sm:$0xff] }
  0x5c   :  { %2166 = vmatprep.subr.bf16.mxu1 %v2165_v60  ;;  %v2183_v60 = vpack.c.bf16 %v236_v53, %v235_v52  ;;  %v2393_v52 = vld [vmem:[%s3802_s0 + $0x20] ss:$48 sps:$4 sm:$0xff]  }
  0x5d   :  { %2136 = vmatpush3.bf16.msra.mxu0 %v2135_v63  ;;  %v2185_v63 = vpack.c.bf16 %v254_v56, %v253_v55  ;;  %v2395_v53 = vld [vmem:[%s3802_s0 + $0x80] ss:$48 sps:$4 sm:$0xff]   ;;  %v246_v56 = vld [vmem:[%s3803_s1 + $0x678] sm:$0xff]  ;;  %v3360_v4 = vrot.slane %v2393_v52, %v2631_v23 }
  0x5e   :  { %2138 = vmatprep.subr.bf16.mxu0 %v2137_v2  ;;  %v2215_v2 = vpack.c.bf16 %v268_v59, %v267_v58  ;;  %v245_v55 = vld [vmem:[%s3803_s1 + $0x670] sm:$0xff]  ;;  %v312_v59 = vld [vmem:[%s3803_s1 + $0x888] sm:$0xff] }
  0x5f   :  { %2168 = vmatpush3.bf16.msra.mxu1 %v2167_v5  ;;  %v2217_v5 = vpack.c.bf16 %v286_v62, %v285_v61  ;;  %v2398_v61 = vld [vmem:[%s3802_s0 + $0x84] ss:$48 sps:$4 sm:$0xff]  }
  0x60   :  { %2170 = vmatprep.subr.bf16.mxu1 %v2169_v8  ;;  %v2187_v8 = vpack.c.bf16 %v238_v1, %v237_v0  ;;  %v278_v0 = vld [vmem:[%s3803_s1 + $0x778] sm:$0xff]  ;;  %v2203_v1 = vpack.c.bf16 %v246_v56, %v245_v55  ;;  %v333_v56 = vld [vmem:[%s3803_s1 + $0x930] sm:$0xff] }
  0x61   :  { %2140 = vmatpush3.bf16.msra.mxu0 %v2139_v12  ;;  %v239_v12 = vld [vmem:[%s3803_s1 + $0x640] sm:$0xff] }
  0x62   :  { %2174 = vmatprep.subr.bf16.mxu0 %v2173_v18  ;;  %v258_v18 = vld [vmem:[%s3803_s1 + $0x6d8] sm:$0xff]  ;;  %v2191_v25 = vpack.c.bf16 %v240_v13, %v239_v12  ;;  %v3381_v13 = vrot.slane %v2398_v61, %v2631_v23  ;;  %v351_v61 = vld [vmem:[%s3803_s1 + $0x9c0] sm:$0xff] }
  0x63   :  { %2172 = vmatpush3.bf16.msra.mxu1 %v2171_v26  ;;  %v289_v26 = vld [vmem:[%s3803_s1 + $0x7d0] sm:$0xff] }
  0x64   :  { %1039 = vmatmul.mubr.f32.vlgmr.msra.gmra.mrb[4].mxu0 %v558_v27  ;;  %2206 = vmatprep.subr.bf16.mxu1 %v2205_v28  ;;  %v290_v27 = vld [vmem:[%s3803_s1 + $0x7d8] sm:$0xff]  ;;  %v2193_v28 = vpack.c.bf16 %v258_v18, %v257_v17  ;;  %v327_v18 = vld [vmem:[%s3803_s1 + $0x900] sm:$0xff] }
  0x65   :  { %2176 = vmatpush3.bf16.msra.mxu0 %v2175_v32  ;;  %1178 = vmatprep.mubr.f32.mxu0 %v595_v46  ;;  %v259_v32 = vld [vmem:[%s3803_s1 + $0x6e0] sm:$0xff]  ;;  %v2225_v14 = vpack.c.bf16 %v290_v27, %v289_v26  ;;  %v297_v27 = vld [vmem:[%s3803_s1 + $0x810] sm:$0xff] }
  0x66   :  { %1109 = vmatmul.mubr.f32.vlgmr.msra.gmra.mrb[4].mxu1 %v560_v34  ;;  %2178 = vmatprep.subr.bf16.mxu0 %v2177_v35  ;;  %v274_v34 = vld [vmem:[%s3803_s1 + $0x758] sm:$0xff]  ;;  %v243_v35 = vld [vmem:[%s3803_s1 + $0x660] sm:$0xff]  ;;  %v2197_v20 = vpack.c.bf16 %v260_v33, %v259_v32  ;;  %v329_v32 = vld [vmem:[%s3803_s1 + $0x910] sm:$0xff] }
  0x67   :  { %2208 = vmatpush3.bf16.msra.mxu1 %v2207_v40  ;;  %1248 = vmatprep.mubr.f32.mxu1 %v597_v50  ;;  %v291_v40 = vld [vmem:[%s3803_s1 + $0x7e0] sm:$0xff]  ;;  %v2227_v45 = vpack.c.bf16 %v274_v34, %v273_v15  ;;  %v2199_v50 = vpack.c.bf16 %v244_v37, %v243_v35  ;;  %v330_v33 = vld [vmem:[%s3803_s1 + $0x918] sm:$0xff]  ;;  %v348_v34 = vld [vmem:[%s3803_s1 + $0x9a8] sm:$0xff] }
  0x68   :  { %2210 = vmatprep.subr.bf16.mxu1 %v2209_v43  ;;  %v261_v43 = vld [vmem:[%s3803_s1 + $0x6f0] sm:$0xff]  ;;  %v2229_v46 = vpack.c.bf16 %v292_v19, %v291_v40  ;;  %v347_v15 = vld [vmem:[%s3803_s1 + $0x9a0] sm:$0xff]  ;;  %v300_v37 = vld [vmem:[%s3803_s1 + $0x828] sm:$0xff]  ;;  %v2275_v40 = vpack.c.bf16 %v330_v33, %v329_v32 }
  0x69   :  { %2180 = vmatpush3.bf16.msra.mxu0 %v2179_v47  ;;  %v275_v47 = vld [vmem:[%s3803_s1 + $0x760] sm:$0xff]  ;;  %v317_v19 = vld [vmem:[%s3803_s1 + $0x8b0] sm:$0xff] }
  0x6a   :  { %2182 = vmatprep.subr.bf16.mxu0 %v2181_v51  ;;  %v294_v51 = vld [vmem:[%s3803_s1 + $0x7f8] sm:$0xff]  ;;  %v2231_v58 = vpack.c.bf16 %v276_v48, %v275_v47  ;;  %v349_v47 = vld [vmem:[%s3803_s1 + $0x9b0] sm:$0xff]  ;;  %v339_v33 = vld [vmem:[%s3803_s1 + $0x960] sm:$0xff] }
  0x6b   :  { %2212 = vmatpush3.bf16.msra.mxu1 %v2211_v54  ;;  %v2201_v54 = vpack.c.bf16 %v262_v44, %v261_v43  ;;  %v2233_v62 = vpack.c.bf16 %v294_v51, %v293_v49  ;;  %v2277_v43 = vpack.c.bf16 %v348_v34, %v347_v15  ;;  %v331_v44 = vld [vmem:[%s3803_s1 + $0x920] sm:$0xff]  ;;  %v350_v48 = vld [vmem:[%s3803_s1 + $0x9b8] sm:$0xff]  ;;  %v357_v15 = vld [vmem:[%s3803_s1 + $0x9f0] sm:$0xff] }
  0x6c   :  { %2214 = vmatprep.subr.bf16.mxu1 %v2213_v57  ;;  %v311_v57 = vld [vmem:[%s3803_s1 + $0x880] sm:$0xff]  ;;  %v302_v51 = vld [vmem:[%s3803_s1 + $0x838] sm:$0xff]  ;;  %v2281_v55 = vpack.c.bf16 %v350_v48, %v349_v47 }
  0x6d   :  { %2184 = vmatpush3.bf16.msra.mxu0 %v2183_v60  ;;  %v2397_v60 = vld [vmem:[%s3802_s0 + $0x24] ss:$48 sps:$4 sm:$0xff]   ;;  %v2237_v6 = vpack.c.bf16 %v312_v59, %v311_v57  ;;  %v334_v57 = vld [vmem:[%s3803_s1 + $0x938] sm:$0xff] }
  0x6e   :  { %2186 = vmatprep.subr.bf16.mxu0 %v2185_v63  ;;  %v277_v63 = vld [vmem:[%s3803_s1 + $0x770] sm:$0xff]  ;;  %v3378_v12 = vrot.slane %v2397_v60, %v2631_v23  ;;  %v304_v60 = vld [vmem:[%s3803_s1 + $0x848] sm:$0xff] }
  0x6f   :  { %2216 = vmatpush3.bf16.msra.mxu1 %v2215_v2  ;;  %v343_v2 = vld [vmem:[%s3803_s1 + $0x980] sm:$0xff]  ;;  %v2235_v9 = vpack.c.bf16 %v278_v0, %v277_v63  ;;  %v321_v0 = vld [vmem:[%s3803_s1 + $0x8d0] sm:$0xff]  ;;  %v2404_v47 = vld [vmem:[%s3802_s0 + $0x8c] ss:$48 sps:$4 sm:$0xff]  }
  0x70   :  { %2218 = vmatprep.subr.bf16.mxu1 %v2217_v5  ;;  %v3363_v5 = vrot.slane %v2395_v53, %v2631_v23  ;;  %v2269_v17 = vpack.c.bf16 %v344_v3, %v343_v2  ;;  %v319_v53 = vld [vmem:[%s3803_s1 + $0x8c0] sm:$0xff]  ;;  %v2283_v2 = vpack.c.bf16 %v334_v57, %v333_v56 }
  0x71   :  { %2188 = vmatpush3.bf16.msra.mxu0 %v2187_v8  ;;  %v296_v8 = vld [vmem:[%s3803_s1 + $0x808] sm:$0xff]  ;;  %v359_v57 = vld [vmem:[%s3803_s1 + $0xa00] sm:$0xff] }
  0x72   :  { %2190 = vmatprep.subr.bf16.mxu0 %v2189_v11  ;;  %v314_v11 = vld [vmem:[%s3803_s1 + $0x898] sm:$0xff]  ;;  %v2239_v22 = vpack.c.bf16 %v296_v8, %v295_v7  ;;  %v336_v7 = vld [vmem:[%s3803_s1 + $0x948] sm:$0xff] }
  0x73   :  { %2220 = vmatpush3.bf16.msra.mxu1 %v2219_v16  ;;  %v594_v16 = vcombine.low %v3170_v38, %v3173_v39  ;;  %v631_v38 = vcombine.high %v3360_v4, %v3363_v5  ;;  %v596_v39 = vcombine.low %v3182_v41, %v3185_v42  ;;  %v2241_v26 = vpack.c.bf16 %v314_v11, %v313_v10  ;;  %v354_v10 = vld [vmem:[%s3803_s1 + $0x9d8] sm:$0xff] }
  0x74   :  { %2222 = vmatprep.subr.bf16.mxu1 %v2221_v21  ;;  %v328_v21 = vld [vmem:[%s3803_s1 + $0x908] sm:$0xff]  ;;  %v633_v41 = vcombine.high %v3378_v12, %v3381_v13 }
  0x75   :  { %2192 = vmatpush3.bf16.msra.mxu0 %v2191_v25  ;;  %v346_v25 = vld [vmem:[%s3803_s1 + $0x998] sm:$0xff]  ;;  %v2271_v29 = vpack.c.bf16 %v328_v21, %v327_v18  ;;  %v323_v21 = vld [vmem:[%s3803_s1 + $0x8e0] sm:$0xff] }
  0x76   :  { %2194 = vmatprep.subr.bf16.mxu0 %v2193_v28  ;;  %v298_v28 = vld [vmem:[%s3803_s1 + $0x818] sm:$0xff]  ;;  %v2273_v42 = vpack.c.bf16 %v346_v25, %v345_v24  ;;  %v337_v25 = vld [vmem:[%s3803_s1 + $0x950] sm:$0xff] }
  0x77   :  { %2224 = vmatpush3.bf16.msra.mxu1 %v2223_v31  ;;  %v316_v31 = vld [vmem:[%s3803_s1 + $0x8a8] sm:$0xff] }
  0x78   :  { %2226 = vmatprep.subr.bf16.mxu1 %v2225_v14  ;;  %v2243_v14 = vpack.c.bf16 %v298_v28, %v297_v27  ;;  %v2245_v35 = vpack.c.bf16 %v316_v31, %v315_v30  ;;  %v356_v27 = vld [vmem:[%s3803_s1 + $0x9e8] sm:$0xff] }
  0x79   :  { %2196 = vmatpush3.bf16.msra.mxu0 %v2195_v36  ;;  %v299_v36 = vld [vmem:[%s3803_s1 + $0x820] sm:$0xff]  ;;  %v308_v30 = vld [vmem:[%s3803_s1 + $0x868] sm:$0xff] }
  0x7a   :  { %2198 = vmatprep.subr.bf16.mxu0 %v2197_v20  ;;  %v318_v20 = vld [vmem:[%s3803_s1 + $0x8b8] sm:$0xff] }
  0x7b   :  { %2228 = vmatpush3.bf16.msra.mxu1 %v2227_v45  ;;  %v332_v45 = vld [vmem:[%s3803_s1 + $0x928] sm:$0xff]  ;;  %v2249_v49 = vpack.c.bf16 %v318_v20, %v317_v19  ;;  %v309_v19 = vld [vmem:[%s3803_s1 + $0x870] sm:$0xff]  ;;  %v310_v20 = vld [vmem:[%s3803_s1 + $0x878] sm:$0xff] }
  0x7c   :  { %2230 = vmatprep.subr.bf16.mxu1 %v2229_v46  ;;  %v2247_v46 = vpack.c.bf16 %v300_v37, %v299_v36  ;;  %v2279_v52 = vpack.c.bf16 %v332_v45, %v331_v44  ;;  %v2399_v36 = vld [vmem:[%s3802_s0 + $0x28] ss:$48 sps:$4 sm:$0xff]  }
  0x7d   :  { %2200 = vmatpush3.bf16.msra.mxu0 %v2199_v50  ;;  %v301_v50 = vld [vmem:[%s3803_s1 + $0x830] sm:$0xff]  ;;  %v2401_v37 = vld [vmem:[%s3802_s0 + $0x88] ss:$48 sps:$4 sm:$0xff]  }
  0x7e   :  { %2202 = vmatprep.subr.bf16.mxu0 %v2201_v54  ;;  %v320_v54 = vld [vmem:[%s3803_s1 + $0x8c8] sm:$0xff]  ;;  %v2251_v59 = vpack.c.bf16 %v302_v51, %v301_v50  ;;  %v342_v50 = vld [vmem:[%s3803_s1 + $0x978] sm:$0xff]  ;;  %v2267_v51 = vpack.c.bf16 %v310_v20, %v309_v19  ;;  %v397_v19 = vld [vmem:[%s3803_s1 + $0xb30] sm:$0xff] }
  0x7f   :  { %2232 = vmatpush3.bf16.msra.mxu1 %v2231_v58  ;;  %v303_v58 = vld [vmem:[%s3803_s1 + $0x840] sm:$0xff]  ;;  %v2253_v63 = vpack.c.bf16 %v320_v54, %v319_v53  ;;  %v376_v45 = vld [vmem:[%s3803_s1 + $0xa88] sm:$0xff]  ;;  %v3584_v54 = vrot.slane %v2399_v36, %v2631_v23  ;;  %v398_v20 = vld [vmem:[%s3803_s1 + $0xb38] sm:$0xff] }
  0x80   :  { %2234 = vmatprep.subr.bf16.mxu1 %v2233_v62  ;;  %v352_v62 = vld [vmem:[%s3803_s1 + $0x9c8] sm:$0xff]  ;;  %v2255_v8 = vpack.c.bf16 %v304_v60, %v303_v58  ;;  %v377_v60 = vld [vmem:[%s3803_s1 + $0xa90] sm:$0xff]  ;;  %v383_v36 = vld [vmem:[%s3803_s1 + $0xac0] sm:$0xff] }
  0x81   :  { %2204 = vmatpush3.bf16.msra.mxu0 %v2203_v1  ;;  %v322_v1 = vld [vmem:[%s3803_s1 + $0x8d8] sm:$0xff]  ;;  %v2285_v3 = vpack.c.bf16 %v352_v62, %v351_v61  ;;  %v408_v53 = vld [vmem:[%s3803_s1 + $0xb88] sm:$0xff] }
  0x82   :  { %2238 = vmatprep.subr.bf16.mxu0 %v2237_v6  ;;  %v335_v6 = vld [vmem:[%s3803_s1 + $0x940] sm:$0xff]  ;;  %v2257_v11 = vpack.c.bf16 %v322_v1, %v321_v0  ;;  %v360_v58 = vld [vmem:[%s3803_s1 + $0xa08] sm:$0xff]  ;;  %v378_v61 = vld [vmem:[%s3803_s1 + $0xa98] sm:$0xff]  ;;  %v630_v0 = vcombine.low %v3360_v4, %v3363_v5  ;;  %v632_v5 = vcombine.low %v3378_v12, %v3381_v13 }
  0x83   :  { %2236 = vmatpush3.bf16.msra.mxu1 %v2235_v9  ;;  %v353_v9 = vld [vmem:[%s3803_s1 + $0x9d0] sm:$0xff]  ;;  %v2287_v18 = vpack.c.bf16 %v336_v7, %v335_v6  ;;  %v2303_v6 = vpack.c.bf16 %v360_v58, %v359_v57  ;;  %v410_v7 = vld [vmem:[%s3803_s1 + $0xb98] sm:$0xff] }
  0x84   :  { %1179 = vmatmul.mubr.f32.vlgmr.msra.gmra.mrb[6].mxu0 %v594_v16  ;;  %2270 = vmatprep.subr.bf16.mxu1 %v2269_v17  ;;  %v305_v16 = vld [vmem:[%s3803_s1 + $0x850] sm:$0xff]  ;;  %v306_v17 = vld [vmem:[%s3803_s1 + $0x858] sm:$0xff]  ;;  %v2289_v24 = vpack.c.bf16 %v354_v10, %v353_v9 }
  0x85   :  { %2240 = vmatpush3.bf16.msra.mxu0 %v2239_v22  ;;  %1318 = vmatprep.mubr.f32.mxu0 %v631_v38  ;;  %v324_v22 = vld [vmem:[%s3803_s1 + $0x8e8] sm:$0xff]  ;;  %v338_v38 = vld [vmem:[%s3803_s1 + $0x958] sm:$0xff]  ;;  %v361_v9 = vld [vmem:[%s3803_s1 + $0xa10] sm:$0xff] }
  0x86   :  { %1249 = vmatmul.mubr.f32.vlgmr.msra.gmra.mrb[6].mxu1 %v596_v39  ;;  %2242 = vmatprep.subr.bf16.mxu0 %v2241_v26  ;;  %v2259_v39 = vpack.c.bf16 %v306_v17, %v305_v16  ;;  %v355_v26 = vld [vmem:[%s3803_s1 + $0x9e0] sm:$0xff]  ;;  %v2261_v28 = vpack.c.bf16 %v324_v22, %v323_v21  ;;  %v2291_v31 = vpack.c.bf16 %v338_v38, %v337_v25  ;;  %v362_v10 = vld [vmem:[%s3803_s1 + $0xa18] sm:$0xff]  ;;  %v380_v17 = vld [vmem:[%s3803_s1 + $0xaa8] sm:$0xff] }
  0x87   :  { %2272 = vmatpush3.bf16.msra.mxu1 %v2271_v29  ;;  %1388 = vmatprep.mubr.f32.mxu1 %v633_v41  ;;  %v307_v29 = vld [vmem:[%s3803_s1 + $0x860] sm:$0xff]  ;;  %v325_v41 = vld [vmem:[%s3803_s1 + $0x8f0] sm:$0xff]  ;;  %v2293_v32 = vpack.c.bf16 %v356_v27, %v355_v26  ;;  %v394_v21 = vld [vmem:[%s3803_s1 + $0xb18] sm:$0xff]  ;;  %v2307_v22 = vpack.c.bf16 %v362_v10, %v361_v9 }
  0x88   :  { %2274 = vmatprep.subr.bf16.mxu1 %v2273_v42  ;;  %v326_v42 = vld [vmem:[%s3803_s1 + $0x8f8] sm:$0xff]  ;;  %v2263_v34 = vpack.c.bf16 %v308_v30, %v307_v29  ;;  %v379_v16 = vld [vmem:[%s3803_s1 + $0xaa0] sm:$0xff]  ;;  %v412_v25 = vld [vmem:[%s3803_s1 + $0xba8] sm:$0xff] }
  0x89   :  { %2244 = vmatpush3.bf16.msra.mxu0 %v2243_v14  ;;  %v340_v14 = vld [vmem:[%s3803_s1 + $0x968] sm:$0xff]  ;;  %v2309_v38 = vpack.c.bf16 %v380_v17, %v379_v16  ;;  %v382_v29 = vld [vmem:[%s3803_s1 + $0xab8] sm:$0xff]  ;;  %v417_v58 = vld [vmem:[%s3803_s1 + $0xbd0] sm:$0xff] }
  0x8a   :  { %2246 = vmatprep.subr.bf16.mxu0 %v2245_v35  ;;  %v358_v35 = vld [vmem:[%s3803_s1 + $0x9f8] sm:$0xff]  ;;  %v2295_v44 = vpack.c.bf16 %v340_v14, %v339_v33  ;;  %v364_v26 = vld [vmem:[%s3803_s1 + $0xa28] sm:$0xff]  ;;  %v371_v10 = vld [vmem:[%s3803_s1 + $0xa60] sm:$0xff] }
  0x8b   :  { %2276 = vmatpush3.bf16.msra.mxu1 %v2275_v40  ;;  %v2265_v40 = vpack.c.bf16 %v326_v42, %v325_v41  ;;  %v2297_v48 = vpack.c.bf16 %v358_v35, %v357_v15  ;;  %v396_v41 = vld [vmem:[%s3803_s1 + $0xb28] sm:$0xff]  ;;  %v414_v33 = vld [vmem:[%s3803_s1 + $0xbb8] sm:$0xff]  ;;  %v365_v15 = vld [vmem:[%s3803_s1 + $0xa30] sm:$0xff] }
  0x8c   :  { %2278 = vmatprep.subr.bf16.mxu1 %v2277_v43  ;;  %v375_v43 = vld [vmem:[%s3803_s1 + $0xa80] sm:$0xff]  ;;  %v389_v17 = vld [vmem:[%s3803_s1 + $0xaf0] sm:$0xff] }
  0x8d   :  { %2248 = vmatpush3.bf16.msra.mxu0 %v2247_v46  ;;  %v2403_v46 = vld [vmem:[%s3802_s0 + $0x2c] ss:$48 sps:$4 sm:$0xff]   ;;  %v2301_v56 = vpack.c.bf16 %v376_v45, %v375_v43 }
  0x8e   :  { %2250 = vmatprep.subr.bf16.mxu0 %v2249_v49  ;;  %v341_v49 = vld [vmem:[%s3803_s1 + $0x970] sm:$0xff]  ;;  %v3602_v62 = vrot.slane %v2403_v46, %v2631_v23  ;;  %v416_v45 = vld [vmem:[%s3803_s1 + $0xbc8] sm:$0xff] }
  0x8f   :  { %2280 = vmatpush3.bf16.msra.mxu1 %v2279_v52  ;;  %v407_v52 = vld [vmem:[%s3803_s1 + $0xb80] sm:$0xff] }
  0x90   :  { %2282 = vmatprep.subr.bf16.mxu1 %v2281_v55  ;;  %v3587_v55 = vrot.slane %v2401_v37, %v2631_v23  ;;  %v2333_v1 = vpack.c.bf16 %v408_v53, %v407_v52  ;;  %v384_v37 = vld [vmem:[%s3803_s1 + $0xac8] sm:$0xff]  ;;  %v399_v53 = vld [vmem:[%s3803_s1 + $0xb40] sm:$0xff] }
  0x91   :  { %2252 = vmatpush3.bf16.msra.mxu0 %v2251_v59  ;;  %v2299_v59 = vpack.c.bf16 %v342_v50, %v341_v49  ;;  %v2317_v46 = vpack.c.bf16 %v384_v37, %v383_v36  ;;  %v2347_v49 = vpack.c.bf16 %v398_v20, %v397_v19  ;;  %v385_v50 = vld [vmem:[%s3803_s1 + $0xad0] sm:$0xff] }
  0x92   :  { %2254 = vmatprep.subr.bf16.mxu0 %v2253_v63  ;;  %v3605_v63 = vrot.slane %v2404_v47, %v2631_v23  ;;  %v409_v23 = vld [vmem:[%s3803_s1 + $0xb90] sm:$0xff]  ;;  %v667_v4 = vcombine.high %v3584_v54, %v3587_v55  ;;  %v367_v47 = vld [vmem:[%s3803_s1 + $0xa40] sm:$0xff] }
  0x93   :  { %2284 = vmatpush3.bf16.msra.mxu1 %v2283_v2  ;;  %v391_v2 = vld [vmem:[%s3803_s1 + $0xb00] sm:$0xff]  ;;  %v2337_v13 = vpack.c.bf16 %v410_v7, %v409_v23  ;;  %v401_v23 = vld [vmem:[%s3803_s1 + $0xb50] sm:$0xff]  ;;  %v402_v7 = vld [vmem:[%s3803_s1 + $0xb58] sm:$0xff] }
  0x94   :  { %2286 = vmatprep.subr.bf16.mxu1 %v2285_v3  ;;  %v392_v3 = vld [vmem:[%s3803_s1 + $0xb08] sm:$0xff]  ;;  %v669_v12 = vcombine.high %v3602_v62, %v3605_v63  ;;  %v2355_v16 = vpack.c.bf16 %v402_v7, %v401_v23 }
  0x95   :  { %2256 = vmatpush3.bf16.msra.mxu0 %v2255_v8  ;;  %v2305_v8 = vpack.c.bf16 %v378_v61, %v377_v60  ;;  %v369_v61 = vld [vmem:[%s3803_s1 + $0xa50] sm:$0xff] }
  0x96   :  { %2258 = vmatprep.subr.bf16.mxu0 %v2257_v11  ;;  %v2335_v11 = vpack.c.bf16 %v392_v3, %v391_v2  ;;  %v387_v2 = vld [vmem:[%s3803_s1 + $0xae0] sm:$0xff]  ;;  %v388_v3 = vld [vmem:[%s3803_s1 + $0xae8] sm:$0xff] }
  0x97   :  { %2288 = vmatpush3.bf16.msra.mxu1 %v2287_v18  ;;  %v393_v18 = vld [vmem:[%s3803_s1 + $0xb10] sm:$0xff]  ;;  %v2325_v9 = vpack.c.bf16 %v388_v3, %v387_v2 }
  0x98   :  { %2290 = vmatprep.subr.bf16.mxu1 %v2289_v24  ;;  %v411_v24 = vld [vmem:[%s3803_s1 + $0xba0] sm:$0xff]  ;;  %v2339_v27 = vpack.c.bf16 %v394_v21, %v393_v18  ;;  %v404_v21 = vld [vmem:[%s3803_s1 + $0xb68] sm:$0xff] }
  0x99   :  { %2260 = vmatpush3.bf16.msra.mxu0 %v2259_v39  ;;  %v363_v39 = vld [vmem:[%s3803_s1 + $0xa20] sm:$0xff]  ;;  %v2341_v30 = vpack.c.bf16 %v412_v25, %v411_v24  ;;  %v421_v24 = vld [vmem:[%s3803_s1 + $0xbf0] sm:$0xff]  ;;  %v422_v25 = vld [vmem:[%s3803_s1 + $0xbf8] sm:$0xff] }
  0x9a   :  { %2262 = vmatprep.subr.bf16.mxu0 %v2261_v28  ;;  %v381_v28 = vld [vmem:[%s3803_s1 + $0xab0] sm:$0xff]  ;;  %v2311_v42 = vpack.c.bf16 %v364_v26, %v363_v39  ;;  %v403_v18 = vld [vmem:[%s3803_s1 + $0xb60] sm:$0xff]  ;;  %v374_v26 = vld [vmem:[%s3803_s1 + $0xa78] sm:$0xff] }
  0x9b   :  { %2292 = vmatpush3.bf16.msra.mxu1 %v2291_v31  ;;  %v395_v31 = vld [vmem:[%s3803_s1 + $0xb20] sm:$0xff]  ;;  %v2313_v14 = vpack.c.bf16 %v382_v29, %v381_v28  ;;  %v373_v39 = vld [vmem:[%s3803_s1 + $0xa70] sm:$0xff]  ;;  %v2361_v28 = vpack.c.bf16 %v422_v25, %v421_v24 }
  0x9c   :  { %2294 = vmatprep.subr.bf16.mxu1 %v2293_v32  ;;  %v413_v32 = vld [vmem:[%s3803_s1 + $0xbb0] sm:$0xff]  ;;  %v2343_v35 = vpack.c.bf16 %v396_v41, %v395_v31  ;;  %v2331_v31 = vpack.c.bf16 %v374_v26, %v373_v39 }
  0x9d   :  { %2264 = vmatpush3.bf16.msra.mxu0 %v2263_v34  ;;  %v366_v34 = vld [vmem:[%s3803_s1 + $0xa38] sm:$0xff]  ;;  %v405_v29 = vld [vmem:[%s3803_s1 + $0xb70] sm:$0xff] }
  0x9e   :  { %2266 = vmatprep.subr.bf16.mxu0 %v2265_v40  ;;  %v2345_v40 = vpack.c.bf16 %v414_v33, %v413_v32  ;;  %v2315_v43 = vpack.c.bf16 %v366_v34, %v365_v15  ;;  %v668_v32 = vcombine.low %v3602_v62, %v3605_v63 }
  0x9f   :  { %2296 = vmatpush3.bf16.msra.mxu1 %v2295_v44  ;;  %v415_v44 = vld [vmem:[%s3803_s1 + $0xbc0] sm:$0xff] }
  0xa0   :  { %2298 = vmatprep.subr.bf16.mxu1 %v2297_v48  ;;  %v368_v48 = vld [vmem:[%s3803_s1 + $0xa48] sm:$0xff]  ;;  %v2349_v52 = vpack.c.bf16 %v416_v45, %v415_v44 }
  0xa1   :  { %2268 = vmatpush3.bf16.msra.mxu0 %v2267_v51  ;;  %v386_v51 = vld [vmem:[%s3803_s1 + $0xad8] sm:$0xff]  ;;  %v2319_v57 = vpack.c.bf16 %v368_v48, %v367_v47 }
  0xa2   :  { %2302 = vmatprep.subr.bf16.mxu0 %v2301_v56  ;;  %v400_v56 = vld [vmem:[%s3803_s1 + $0xb48] sm:$0xff]  ;;  %v2321_v60 = vpack.c.bf16 %v386_v51, %v385_v50 }
  0xa3   :  { %2300 = vmatpush3.bf16.msra.mxu1 %v2299_v59  ;;  %v418_v59 = vld [vmem:[%s3803_s1 + $0xbd8] sm:$0xff] }
  0xa4   :  { %1319 = vmatmul.mubr.f32.vlgmr.msra.gmra.mrb[8].mxu0 %v630_v0  ;;  %2334 = vmatprep.subr.bf16.mxu1 %v2333_v1  ;;  %v370_v0 = vld [vmem:[%s3803_s1 + $0xa58] sm:$0xff]  ;;  %v2351_v1 = vpack.c.bf16 %v400_v56, %v399_v53 }
  0xa5   :  { %2304 = vmatpush3.bf16.msra.mxu0 %v2303_v6  ;;  %1458 = vmatprep.mubr.f32.mxu0 %v667_v4  ;;  %v2353_v6 = vpack.c.bf16 %v418_v59, %v417_v58  ;;  %v2323_v4 = vpack.c.bf16 %v370_v0, %v369_v61 }
  0xa6   :  { %1389 = vmatmul.mubr.f32.vlgmr.msra.gmra.mrb[8].mxu1 %v632_v5  ;;  %2306 = vmatprep.subr.bf16.mxu0 %v2305_v8  ;;  %v419_v5 = vld [vmem:[%s3803_s1 + $0xbe0] sm:$0xff]  ;;  %v420_v8 = vld [vmem:[%s3803_s1 + $0xbe8] sm:$0xff] }
  0xa7   :  { %2336 = vmatpush3.bf16.msra.mxu1 %v2335_v11  ;;  %1528 = vmatprep.mubr.f32.mxu1 %v669_v12  ;;  %v372_v11 = vld [vmem:[%s3803_s1 + $0xa68] sm:$0xff]  ;;  %v390_v12 = vld [vmem:[%s3803_s1 + $0xaf8] sm:$0xff] }
  0xa8   :  { %2338 = vmatprep.subr.bf16.mxu1 %v2337_v13  ;;  %v2357_v13 = vpack.c.bf16 %v420_v8, %v419_v5 }
  0xa9   :  { %2308 = vmatpush3.bf16.msra.mxu0 %v2307_v22  ;;  %v2327_v22 = vpack.c.bf16 %v372_v11, %v371_v10 }
  0xaa   :  { %2310 = vmatprep.subr.bf16.mxu0 %v2309_v38  ;;  %v2329_v38 = vpack.c.bf16 %v390_v12, %v389_v17 }
  0xab   :  { %2340 = vmatpush3.bf16.msra.mxu1 %v2339_v27  ;;  %v2359_v27 = vpack.c.bf16 %v404_v21, %v403_v18 }
  0xac   :  { %2342 = vmatprep.subr.bf16.mxu1 %v2341_v30  ;;  %v406_v30 = vld [vmem:[%s3803_s1 + $0xb78] sm:$0xff] }
  0xad   :  { %2312 = vmatpush3.bf16.msra.mxu0 %v2311_v42  ;;  %v2363_v41 = vpack.c.bf16 %v406_v30, %v405_v29  ;;  %v666_v42 = vcombine.low %v3584_v54, %v3587_v55 }
  0xae   :  { %2314 = vmatprep.subr.bf16.mxu0 %v2313_v14  ;;  %v1560_v14 = vld [vmem:[%s3804_s2] ss:$0 sm:$0xff] }
  0xaf   :  { %2344 = vmatpush3.bf16.msra.mxu1 %v2343_v35 }
  0xb0   :  { %2346 = vmatprep.subr.bf16.mxu1 %v2345_v40 }
  0xb1   :  { %2316 = vmatpush3.bf16.msra.mxu0 %v2315_v43 }
  0xb2   :  { %2318 = vmatprep.subr.bf16.mxu0 %v2317_v46 }
  0xb3   :  { %2348 = vmatpush3.bf16.msra.mxu1 %v2347_v49 }
  0xb4   :  { %2350 = vmatprep.subr.bf16.mxu1 %v2349_v52 }
  0xb5   :  { %2320 = vmatpush3.bf16.msra.mxu0 %v2319_v57 }
  0xb6   :  { %2322 = vmatprep.subr.bf16.mxu0 %v2321_v60 }
  0xb7   :  { %2352 = vmatpush3.bf16.msra.mxu1 %v2351_v1 }
  0xb8   :  { %2354 = vmatprep.subr.bf16.mxu1 %v2353_v6 }
  0xb9   :  { %2324 = vmatpush3.bf16.msra.mxu0 %v2323_v4 }
  0xba   :  { %2326 = vmatprep.subr.bf16.mxu0 %v2325_v9 }
  0xbb   :  { %2356 = vmatpush3.bf16.msra.mxu1 %v2355_v16 }
  0xbc   :  { %2358 = vmatprep.subr.bf16.mxu1 %v2357_v13 }
  0xbd   :  { %2328 = vmatpush3.bf16.msra.mxu0 %v2327_v22 }
  0xbe   :  { %2330 = vmatprep.subr.bf16.mxu0 %v2329_v38 }
  0xbf   :  { %2360 = vmatpush3.bf16.msra.mxu1 %v2359_v27 }
  0xc0   :  { %2362 = vmatprep.subr.bf16.mxu1 %v2361_v28 }
  0xc1   :  { %2332 = vmatpush3.bf16.msra.mxu0 %v2331_v31 }
  0xc3   :  { %2364 = vmatpush3.bf16.msra.mxu1 %v2363_v41 }
  0xc4   :  { %1459 = vmatmul.mubr.f32.vlgmr.msra.gmra.mrb[10].mxu0 %v666_v42 }
  0xc6   :  { %1529 = vmatmul.mubr.f32.vlgmr.msra.gmra.mrb[10].mxu1 %v668_v32 }
  0xf7   :  { %v1593_v33 = vpop.f32.mrb[0].mxu0 }
  0xf8   :  { %v1594_v15 = vpop.f32.mrb[1].mxu0 }
  0xf9   :  { %v1595_v34 = vadd.f32 %v1594_v15, %v1593_v33  ;;  %v1628_v35 = vpop.f32.mrb[0].mxu1 }
  0xfa   :  { %v1629_v36 = vpop.f32.mrb[1].mxu1 }
  0xfb   :  { %v761_v37 = vadd.f32 %v1595_v34, %v1560_v14  ;;  %v1630_v40 = vadd.f32 %v1629_v36, %v1628_v35 }
  0xfd   :  { %v831_v19 = vadd.f32 %v1630_v40, %v761_v37 }
 0x117   :  { %v1663_v54 = vpop.f32.mrb[2].mxu0 }
 0x118   :  { %v1664_v55 = vpop.f32.mrb[3].mxu0 }
 0x119   :  { %v1665_v20 = vadd.f32 %v1664_v55, %v1663_v54  ;;  %v1698_v43 = vpop.f32.mrb[2].mxu1 }
 0x11a   :  { %v1699_v62 = vpop.f32.mrb[3].mxu1 }
 0x11b   :  { %v901_v63 = vadd.f32 %v1665_v20, %v831_v19  ;;  %v1700_v44 = vadd.f32 %v1699_v62, %v1698_v43 }
 0x11d   :  { %v971_v45 = vadd.f32 %v1700_v44, %v901_v63 }
 0x137   :  { %v1733_v46 = vpop.f32.mrb[4].mxu0 }
 0x138   :  { %v1734_v47 = vpop.f32.mrb[5].mxu0 }
 0x139   :  { %v1735_v48 = vadd.f32 %v1734_v47, %v1733_v46  ;;  %v1768_v49 = vpop.f32.mrb[4].mxu1 }
 0x13a   :  { %v1769_v50 = vpop.f32.mrb[5].mxu1 }
 0x13b   :  { %v1041_v51 = vadd.f32 %v1735_v48, %v971_v45  ;;  %v1770_v52 = vadd.f32 %v1769_v50, %v1768_v49 }
 0x13d   :  { %v1111_v53 = vadd.f32 %v1770_v52, %v1041_v51 }
 0x157   :  { %v1803_v56 = vpop.f32.mrb[6].mxu0 }
 0x158   :  { %v1804_v57 = vpop.f32.mrb[7].mxu0 }
 0x159   :  { %v1805_v58 = vadd.f32 %v1804_v57, %v1803_v56  ;;  %v1838_v59 = vpop.f32.mrb[6].mxu1 }
 0x15a   :  { %v1839_v60 = vpop.f32.mrb[7].mxu1 }
 0x15b   :  { %v1181_v61 = vadd.f32 %v1805_v58, %v1111_v53  ;;  %v1840_v0 = vadd.f32 %v1839_v60, %v1838_v59 }
 0x15d   :  { %v1251_v1 = vadd.f32 %v1840_v0, %v1181_v61 }
 0x177   :  { %v1873_v2 = vpop.f32.mrb[8].mxu0 }
 0x178   :  { %v1874_v3 = vpop.f32.mrb[9].mxu0 }
 0x179   :  { %v1875_v6 = vadd.f32 %v1874_v3, %v1873_v2  ;;  %v1908_v23 = vpop.f32.mrb[8].mxu1 }
 0x17a   :  { %v1909_v7 = vpop.f32.mrb[9].mxu1 }
 0x17b   :  { %v1321_v4 = vadd.f32 %v1875_v6, %v1251_v1  ;;  %v1910_v5 = vadd.f32 %v1909_v7, %v1908_v23 }
 0x17d   :  { %v1391_v8 = vadd.f32 %v1910_v5, %v1321_v4 }
 0x197   :  { %v1943_v9 = vpop.f32.mrb[10].mxu0 }
 0x198   :  { %v1944_v10 = vpop.f32.mrb[11].mxu0 }
 0x199   :  { %v1945_v11 = vadd.f32 %v1944_v10, %v1943_v9  ;;  %v1978_v16 = vpop.f32.mrb[10].mxu1 }
 0x19a   :  { %v1979_v17 = vpop.f32.mrb[11].mxu1 }
 0x19b   :  { %v1461_v12 = vadd.f32 %v1945_v11, %v1391_v8  ;;  %v1980_v13 = vadd.f32 %v1979_v17, %v1978_v16 }
 0x19d   :  { %v1531_v18 = vadd.f32 %v1980_v13, %v1461_v12 }
 0x19f   :  { %1534 = vmax.xlane.f32.xlu0 %v1531_v18 }
 0x22c   :  { %v1535_v21 = vpop.xlane.xlu0 %1534 }
 0x22d   :  { %v1536_v22 = vsub.f32 %v1531_v18, %v1535_v21 }
 0x22f   :  { %v1537_v24 = vmul.f32 1.442695, %v1536_v22 }
 0x231   :  { %2405 = vpow2.f32 %v1537_v24 }
 0x23b   :  { %v2406_v25 = vpop.eup %2405 }
 0x23c   :  { %1539 = vadd.xlane.f32.xlu0 %v2406_v25 }
 0x2c9   :  { %v1540_v38 = vpop.xlane.xlu0 %1539 }
 0x2ca   :  { %2407 = vrcp.f32 %v1540_v38 }
 0x2d4   :  { %v2408_v39 = vpop.eup %2407 }
 0x2d5   :  { %v1542_v26 = vmul.f32 %v2408_v39, %v2406_v25 }
 0x2d7   :  { %1543 = vst [vmem:[#allocation2] sm:$0xff] %v1542_v26 }
 0x2d8   :  { %1548 = vsyncadd [#allocation3], 96  ;;  %s2434_s1 = smov [#allocation2]  }
 0x2d9   :  { %s1549_s2 = sshll.u32 %s2434_s1, 4  ;;  %s1550_s2 = int_to_ptr.vmem [resolvable:$true] %s1549_s2 }
 0x2da   :  { %s2409_s15 = scalar_lea.vmem %s1550_s2, 32  ;;  %s2413_s16 = scalar_lea.vmem %s1550_s2, 128 }
 0x2db   :  { %p2410_p0 = scmp.ne.s32.totalorder %s1550_s2, %s2409_s15  ;;  %p2414_p1 = scmp.lt.s32.totalorder %s1550_s2, %s1550_s2 }
 0x2dc   :  { %p2415_p2 = scmp.lt.s32.totalorder %s2413_s16, %s2409_s15 }
 0x2de   :  { %p2416_p3 = por %p2415_p2, %p2414_p1 }
 0x2e0   :  { %p2417_p4 = pnand %p2416_p3, %p2410_p0 }
 0x2e2   :  { %2420 = shalt.err (!%p2417_p4)
}
 0x2e3   :  { %s2421_s19 = scalar_lea.hbm %s3805_s3, 32 }
 0x2e4   :  { %p2422_p5 = scmp.ne.s32.totalorder %s3805_s3, %s2421_s19  ;;  %p2425_p6 = scmp.lt.u32.totalorder %s2421_s19, %s3805_s3 }
 0x2e6   :  { %p2427_p7 = pnand %p2425_p6, %p2422_p5 }
 0x2e8   :  { %2430 = shalt.err (!%p2427_p7)
}
 0x2e9   :  { %s2435_s24 = smov 32   ;;  %s2436_s25 = smov 2  }
 0x2ea   :  { %1555 = dma.vmem_to_hbm [thread:$0]  %s1550_s2, 32, %s3805_s3, [#allocation3], %s2435_s24, %s2435_s24, %s2436_s25  }
 0x2eb   :  { %2431 = dma.done.wait [#allocation3], 128  }
 0x2ec   :  { %2432 = vsyncadd [#allocation3], 4294967168 }
 0x2ed   :  { %1559 = vsyncpa [#allocation3], 1 }

</bundles_post_ra>
